<compile_context>
chip_gen: v5e
topology: v5e:2x2
jax: 0.10.0
libtpu: 0.0.40
codegen_flags: <defaults>
</compile_context>

<pallas_src>
import functools

import jax
import jax.numpy as jnp
from jax import lax
from jax.experimental import pallas as pl
from jax.experimental.pallas import tpu as pltpu

_LANE = 128
_SUBLANE = 8
_VMEM_LIMIT = 48 * 1024 * 1024        # headroom under v7x's 64 MiB physical VMEM
_BLOCK_BUDGET = 8 * 1024 * 1024       # per streaming block (Pallas double-buffers it)


def _round_up(x, m):
    return ((x + m - 1) // m) * m


def _pick_hw_tile(hw, kdim_p, cout_p):
    """Largest divisor of hw (multiple of 8, <=1024) whose streaming blocks fit budget."""
    best = None
    for t in range(_SUBLANE, min(hw, 1024) + 1, _SUBLANE):
        if hw % t == 0 and t * (kdim_p * 2 + cout_p * 4) <= _BLOCK_BUDGET:
            best = t
    return best if best is not None else hw


def _pick_flat_tile(length, cout_p):
    best = None
    for t in range(_SUBLANE, min(length, 2048) + 1, _SUBLANE):
        if length % t == 0 and t * cout_p * 8 <= _BLOCK_BUDGET:
            best = t
    return best if best is not None else length


def _pick_row_tile(ho, wpp, c_in_p, c_out_p, halo):
    """Output rows per grid step for the fused stride-1 conv."""
    cands = [tr for tr in range(1, ho + 1)
             if ho % tr == 0 and ((tr * wpp) % _SUBLANE == 0 or tr == ho)]

    def nbytes(tr):
        rows_tile = _round_up((tr + halo) * wpp + halo, _SUBLANE)
        return rows_tile * c_in_p * 4 + tr * wpp * c_out_p * 4

    fitting = [tr for tr in cands if nbytes(tr) <= _BLOCK_BUDGET]
    return max(fitting) if fitting else min(cands)


def _group_matrix(cout, cout_p, num_groups):
    """(Cp, Cp) same-group indicator; zero rows/cols for padded channels so they never
    contribute to (or receive) group statistics."""
    cg = max(cout // num_groups, 1)
    c = jnp.arange(cout_p)
    real = c < cout
    grp = c // cg
    same = (grp[:, None] == grp[None, :]) & real[:, None] & real[None, :]
    return same.astype(jnp.float32)


def _pad_vec(v, cout_p):
    return jnp.pad(v, (0, cout_p - v.shape[0])).reshape(1, cout_p).astype(jnp.float32)


def _fold_group_stats(sums, gm, gamma, beta, inv_n, eps):
    """Per-channel [sum, sumsq] -> folded per-channel GroupNorm (scale, shift)."""
    s = jnp.dot(sums, gm, preferred_element_type=jnp.float32)   # group sums, per channel
    mean = s[0:1, :] * inv_n
    var = jnp.maximum(s[1:2, :] * inv_n - mean * mean, 0.0)     # guard f32 cancellation
    scale = gamma * lax.rsqrt(var + eps)
    shift = beta - mean * scale
    return jnp.concatenate([scale, shift], axis=0)              # (2, Cp)


# --------------------------- pass-1 kernels (conv + stats) ---------------------------

def _conv1_pass1_kernel(p_ref, w_ref, b_ref, g_ref, bt_ref, gm_ref,
                        y_ref, st_ref, sum_ref, *, inv_n, eps, slope, use_norm):
    # p_ref: (1, T, Kp) bf16   w_ref: (Kp, Cp) bf16   b/g/bt: (1, Cp) f32
    # gm_ref: (Cp, Cp) f32     y_ref: (1, T, Cp) f32  st_ref: (1, 2, Cp) f32
    t = pl.program_id(1)
    last = pl.num_programs(1) - 1

    @pl.when(t == 0)
    def _():
        sum_ref[...] = jnp.zeros_like(sum_ref)

    y = jnp.dot(p_ref[0], w_ref[...], preferred_element_type=jnp.float32) + b_ref[...]

    if use_norm:
        y_ref[0] = y.astype(y_ref.dtype)
        sum_ref[...] += jnp.concatenate(
            [jnp.sum(y, axis=0, keepdims=True),
             jnp.sum(y * y, axis=0, keepdims=True)], axis=0)

        @pl.when(t == last)
        def _():
            st_ref[0] = _fold_group_stats(sum_ref[...], gm_ref[...],
                                          g_ref[...], bt_ref[...], inv_n, eps)
    else:
        y_ref[0] = jnp.where(y > 0, y, slope * y).astype(y_ref.dtype)

        @pl.when(t == last)
        def _():
            st_ref[0] = jnp.concatenate(
                [jnp.ones_like(b_ref[...]), jnp.zeros_like(b_ref[...])], axis=0)


def _conv2_pass1_kernel(x_ref, w_ref, b_ref, g_ref, bt_ref, gm_ref, valid_ref,
                        y_ref, st_ref, sum_ref, *,
                        khs, kws, tr, wpp, inv_n, eps, slope, use_norm):
    # x_ref: (1, 1, rows_tile, Cin_p) f32 -- spatially padded rows, flattened row-major
    # w_ref: (khs*kws, Cin_p, Cout_p) bf16    valid_ref: (1, tr*wpp, 1) f32 column mask
    t = pl.program_id(1)
    last = pl.num_programs(1) - 1

    @pl.when(t == 0)
    def _():
        sum_ref[...] = jnp.zeros_like(sum_ref)

    length = tr * wpp
    cout_p = w_ref.shape[2]
    acc = jnp.zeros((length, cout_p), jnp.float32)
    # Direct KxK stride-1 conv: K*K shifted views of the flattened slab, one matmul each
    # (no 9x im2col blow-up in HBM).  bf16 MXU operands, f32 accumulation.
    for dh in range(khs):
        for dw in range(kws):
            v = x_ref[0, 0, pl.ds(dh * wpp + dw, length), :].astype(jnp.bfloat16)
            acc = acc + jnp.dot(v, w_ref[dh * kws + dw],
                                preferred_element_type=jnp.float32)
    y = acc + b_ref[...]

    if use_norm:
        y_ref[0] = y.astype(y_ref.dtype)
        ym = y * valid_ref[0]                      # exclude halo junk columns from stats
        sum_ref[...] += jnp.concatenate(
            [jnp.sum(ym, axis=0, keepdims=True),
             jnp.sum(ym * ym, axis=0, keepdims=True)], axis=0)

        @pl.when(t == last)
        def _():
            st_ref[0] = _fold_group_stats(sum_ref[...], gm_ref[...],
                                          g_ref[...], bt_ref[...], inv_n, eps)
    else:
        y_ref[0] = jnp.where(y > 0, y, slope * y).astype(y_ref.dtype)

        @pl.when(t == last)
        def _():
            st_ref[0] = jnp.concatenate(
                [jnp.ones_like(b_ref[...]), jnp.zeros_like(b_ref[...])], axis=0)


# ------------------------- pass-2 kernel (normalize + LReLU) -------------------------

def _gn_lrelu_kernel(y_ref, st_ref, o_ref, *, slope):
    st = st_ref[0]                                  # (2, Cp): row0 scale, row1 shift
    y = y_ref[0] * st[0:1, :] + st[1:2, :]
    o_ref[0] = jnp.where(y > 0, y, slope * y).astype(o_ref.dtype)


def _apply_gn_lrelu(y, st, *, slope):
    n, length, cout_p = y.shape
    tile = _pick_flat_tile(length, cout_p)
    return pl.pallas_call(
        functools.partial(_gn_lrelu_kernel, slope=slope),
        out_shape=jax.ShapeDtypeStruct((n, length, cout_p), jnp.float32),
        grid_spec=pltpu.PrefetchScalarGridSpec(
            num_scalar_prefetch=0,
            grid=(n, length // tile),
            in_specs=[
                pl.BlockSpec((1, tile, cout_p), lambda i, t: (i, t, 0)),
                pl.BlockSpec((1, 2, cout_p), lambda i, t: (i, 0, 0)),
            ],
            out_specs=pl.BlockSpec((1, tile, cout_p), lambda i, t: (i, t, 0)),
        ),
        compiler_params=pltpu.CompilerParams(
            dimension_semantics=("parallel", "parallel"),
            vmem_limit_bytes=_VMEM_LIMIT),
    )(y, st)


# ------------------------------------ wrappers ---------------------------------------

def _im2col(x_nhwc, ksize, stride, pad):
    # x: (N, H, W, C) -> (N, Ho*Wo, K*K*C), patch inner order = (kh, kw, cin).
    n, h, w, c = x_nhwc.shape
    xp = jnp.pad(x_nhwc, ((0, 0), (pad, pad), (pad, pad), (0, 0)))
    ho = (h + 2 * pad - ksize) // stride + 1
    wo = (w + 2 * pad - ksize) // stride + 1
    cols = []
    for kh in range(ksize):
        for kw in range(ksize):
            cols.append(xp[:, kh:kh + (ho - 1) * stride + 1:stride,
                           kw:kw + (wo - 1) * stride + 1:stride, :])
    patches = jnp.concatenate(cols, axis=-1)
    return patches.reshape(n, ho * wo, ksize * ksize * c), ho, wo


def _conv_stride2_layer(x_nhwc, w_hwio, b, gamma, beta, *, num_groups, use_norm,
                        eps=1e-5, slope=0.2):
    n = x_nhwc.shape[0]
    khs, kws, cin, cout = w_hwio.shape
    pad = (khs - 1) // 2
    patches, ho, wo = _im2col(x_nhwc, khs, 2, pad)
    hw = ho * wo
    kdim = khs * kws * cin
    kdim_p = _round_up(kdim, _LANE)
    cout_p = _round_up(cout, _LANE)

    patches = jnp.pad(patches, ((0, 0), (0, 0), (0, kdim_p - kdim))).astype(jnp.bfloat16)
    w2 = jnp.pad(w_hwio.reshape(kdim, cout),
                 ((0, kdim_p - kdim), (0, cout_p - cout))).astype(jnp.bfloat16)
    b2, g2, bt2 = [_pad_vec(v, cout_p) for v in (b, gamma, beta)]
    gm = _group_matrix(cout, cout_p, num_groups)

    tile = _pick_hw_tile(hw, kdim_p, cout_p)
    cg = cout // num_groups if use_norm else 1
    inv_n = 1.0 / float(hw * cg)

    kernel = functools.partial(_conv1_pass1_kernel, inv_n=inv_n, eps=eps,
                               slope=slope, use_norm=use_norm)
    y, st = pl.pallas_call(
        kernel,
        out_shape=(jax.ShapeDtypeStruct((n, hw, cout_p), jnp.float32),
                   jax.ShapeDtypeStruct((n, 2, cout_p), jnp.float32)),
        grid_spec=pltpu.PrefetchScalarGridSpec(
            num_scalar_prefetch=0,
            grid=(n, hw // tile),
            in_specs=[
                pl.BlockSpec((1, tile, kdim_p), lambda i, t: (i, t, 0)),
                pl.BlockSpec((kdim_p, cout_p), lambda i, t: (0, 0)),
                pl.BlockSpec((1, cout_p), lambda i, t: (0, 0)),
                pl.BlockSpec((1, cout_p), lambda i, t: (0, 0)),
                pl.BlockSpec((1, cout_p), lambda i, t: (0, 0)),
                pl.BlockSpec((cout_p, cout_p), lambda i, t: (0, 0)),
            ],
            out_specs=(
                pl.BlockSpec((1, tile, cout_p), lambda i, t: (i, t, 0)),
                pl.BlockSpec((1, 2, cout_p), lambda i, t: (i, 0, 0)),
            ),
            scratch_shapes=[pltpu.VMEM((2, cout_p), jnp.float32)],
        ),
        compiler_params=pltpu.CompilerParams(
            dimension_semantics=("parallel", "arbitrary"),
            vmem_limit_bytes=_VMEM_LIMIT),
    )(patches, w2, b2, g2, bt2, gm)

    if use_norm:
        y = _apply_gn_lrelu(y, st, slope=slope)
    return y.reshape(n, ho, wo, cout_p)


def _conv_stride1_layer(x_nhwc, w_hwio, b, gamma, beta, *, num_groups, use_norm,
                        eps=1e-5, slope=0.2):
    n, ho, wo, c_p = x_nhwc.shape                 # channels already lane-padded
    khs, kws, cin, cout = w_hwio.shape
    cout_p = _round_up(cout, _LANE)
    pad = (khs - 1) // 2
    wpp = wo + (kws - 1)
    halo = khs - 1

    w2 = jnp.pad(w_hwio, ((0, 0), (0, 0), (0, c_p - cin), (0, cout_p - cout)))
    w2 = w2.reshape(khs * kws, c_p, cout_p).astype(jnp.bfloat16)
    b2, g2, bt2 = [_pad_vec(v, cout_p) for v in (b, gamma, beta)]
    gm = _group_matrix(cout, cout_p, num_groups)

    tr = _pick_row_tile(ho, wpp, c_p, cout_p, halo)
    num_t = ho // tr
    length = tr * wpp
    rows_tile = _round_up((tr + halo) * wpp + halo, _SUBLANE)

    # Row tiles of the spatially padded activation, flattened row-major -- the kernel
    # rebuilds the K*K shifted views itself, so no im2col patches are written to HBM.
    xp = jnp.pad(x_nhwc, ((0, 0), (pad, pad), (pad, pad), (0, 0)))
    tiles = []
    for t in range(num_t):
        sl = xp[:, t * tr:t * tr + tr + halo, :, :].reshape(n, (tr + halo) * wpp, c_p)
        tiles.append(jnp.pad(sl, ((0, 0), (0, rows_tile - (tr + halo) * wpp), (0, 0))))
    xt = jnp.stack(tiles, axis=1)                 # (N, T, rows_tile, Cin_p) f32

    valid = jnp.tile((jnp.arange(wpp) < wo).astype(jnp.float32), tr).reshape(1, length, 1)

    cg = cout // num_groups if use_norm else 1
    inv_n = 1.0 / float(ho * wo * cg)

    kernel = functools.partial(_conv2_pass1_kernel, khs=khs, kws=kws, tr=tr, wpp=wpp,
                               inv_n=inv_n, eps=eps, slope=slope, use_norm=use_norm)
    y, st = pl.pallas_call(
        kernel,
        out_shape=(jax.ShapeDtypeStruct((n, ho * wpp, cout_p), jnp.float32),
                   jax.ShapeDtypeStruct((n, 2, cout_p), jnp.float32)),
        grid_spec=pltpu.PrefetchScalarGridSpec(
            num_scalar_prefetch=0,
            grid=(n, num_t),
            in_specs=[
                pl.BlockSpec((1, 1, rows_tile, c_p), lambda i, t: (i, t, 0, 0)),
                pl.BlockSpec((khs * kws, c_p, cout_p), lambda i, t: (0, 0, 0)),
                pl.BlockSpec((1, cout_p), lambda i, t: (0, 0)),
                pl.BlockSpec((1, cout_p), lambda i, t: (0, 0)),
                pl.BlockSpec((1, cout_p), lambda i, t: (0, 0)),
                pl.BlockSpec((cout_p, cout_p), lambda i, t: (0, 0)),
                pl.BlockSpec((1, length, 1), lambda i, t: (0, 0, 0)),
            ],
            out_specs=(
                pl.BlockSpec((1, length, cout_p), lambda i, t: (i, t, 0)),
                pl.BlockSpec((1, 2, cout_p), lambda i, t: (i, 0, 0)),
            ),
            scratch_shapes=[pltpu.VMEM((2, cout_p), jnp.float32)],
        ),
        compiler_params=pltpu.CompilerParams(
            dimension_semantics=("parallel", "arbitrary"),
            vmem_limit_bytes=_VMEM_LIMIT),
    )(xt, w2, b2, g2, bt2, gm, valid)

    if use_norm:
        y = _apply_gn_lrelu(y, st, slope=slope)
    return y.reshape(n, ho, wpp, cout_p)[:, :, :wo, :]    # drop halo junk columns


@functools.partial(jax.jit, static_argnames=("num_groups", "use_norm"))
def down_block(x_nchw, params, *, num_groups=4, use_norm=True):
    """Pallas DownBlock forward.  Input NCHW, output NCHW (matching PyTorch)."""
    x = jnp.transpose(x_nchw, (0, 2, 3, 1)).astype(jnp.float32)     # NCHW -> NHWC
    out_ch = params["b1"].shape[0]
    y = _conv_stride2_layer(x, params["w1"], params["b1"], params["g1"], params["bt1"],
                            num_groups=num_groups, use_norm=use_norm)
    y = _conv_stride1_layer(y, params["w2"], params["b2"], params["g2"], params["bt2"],
                            num_groups=num_groups, use_norm=use_norm)
    y = y[..., :out_ch]
    return jnp.transpose(y, (0, 3, 1, 2)).astype(x_nchw.dtype)      # NHWC -> NCHW


# ----------------------------------- reference ----------------------------------------

def _reference_down_block(x_nchw, params, *, num_groups=4, use_norm=True,
                          eps=1e-5, slope=0.2):
    """Pure-JAX reference (lax.conv, f32) for correctness checking."""
    x = jnp.transpose(x_nchw, (0, 2, 3, 1))

    def conv(x, w, b, stride):
        y = lax.conv_general_dilated(
            x, w, window_strides=(stride, stride), padding=((1, 1), (1, 1)),
            dimension_numbers=("NHWC", "HWIO", "NHWC"))
        return y + b

    def gn(y, gamma, beta):
        n, h, wd, c = y.shape
        cg = c // num_groups
        yr = y.reshape(n, h, wd, num_groups, cg)
        mean = yr.mean(axis=(1, 2, 4), keepdims=True)
        var = ((yr - mean) ** 2).mean(axis=(1, 2, 4), keepdims=True)
        yr = (yr - mean) / jnp.sqrt(var + eps)
        return yr.reshape(n, h, wd, c) * gamma + beta

    def lrelu(y):
        return jnp.where(y > 0, y, slope * y)

    y = conv(x, params["w1"], params["b1"], 2)
    if use_norm:
        y = gn(y, params["g1"], params["bt1"])
    y = lrelu(y)
    y = conv(y, params["w2"], params["b2"], 1)
    if use_norm:
        y = gn(y, params["g2"], params["bt2"])
    y = lrelu(y)
    return jnp.transpose(y, (0, 3, 1, 2))


def init_params(key, in_ch, out_ch, kernel_size=3):
    ks = jax.random.split(key, 8)
    scale1 = 1.0 / jnp.sqrt(in_ch * kernel_size * kernel_size)
    scale2 = 1.0 / jnp.sqrt(out_ch * kernel_size * kernel_size)
    return {
        # conv weights stored in HWIO (kh, kw, cin, cout)
        "w1": jax.random.normal(ks[0], (kernel_size, kernel_size, in_ch, out_ch),
                                jnp.float32) * scale1,
        "b1": jax.random.normal(ks[1], (out_ch,), jnp.float32) * scale1,
        "g1": 1.0 + 0.1 * jax.random.normal(ks[2], (out_ch,), jnp.float32),
        "bt1": 0.1 * jax.random.normal(ks[3], (out_ch,), jnp.float32),
        "w2": jax.random.normal(ks[4], (kernel_size, kernel_size, out_ch, out_ch),
                                jnp.float32) * scale2,
        "b2": jax.random.normal(ks[5], (out_ch,), jnp.float32) * scale2,
        "g2": 1.0 + 0.1 * jax.random.normal(ks[6], (out_ch,), jnp.float32),
        "bt2": 0.1 * jax.random.normal(ks[7], (out_ch,), jnp.float32),
    }


if __name__ == "__main__":
    key = jax.random.PRNGKey(0)
    k_x, k_p = jax.random.split(key)

    N, IN_CH, OUT_CH, H, W = 2, 4, 8, 16, 16
    NUM_GROUPS = 4

    x = jax.random.normal(k_x, (N, IN_CH, H, W), jnp.float32)      # NCHW like PyTorch
    params = init_params(k_p, IN_CH, OUT_CH)

    # use_norm=True path (conv -> GN -> LReLU -> conv -> GN -> LReLU)
    out = jax.block_until_ready(
        down_block(x, params, num_groups=NUM_GROUPS, use_norm=True))
    assert out.shape == (N, OUT_CH, H // 2, W // 2), out.shape
    ref = jax.block_until_ready(
        _reference_down_block(x, params, num_groups=NUM_GROUPS, use_norm=True))
    # bf16 MXU operands (f32 accumulation) -> slightly looser tolerance than pure f32.
    assert jnp.allclose(out, ref, atol=5e-2, rtol=5e-2), (
        float(jnp.max(jnp.abs(out - ref))))

    # use_norm=False path (conv -> LReLU -> conv -> LReLU)
    out2 = jax.block_until_ready(
        down_block(x, params, num_groups=NUM_GROUPS, use_norm=False))
    ref2 = jax.block_until_ready(
        _reference_down_block(x, params, num_groups=NUM_GROUPS, use_norm=False))
    assert out2.shape == (N, OUT_CH, H // 2, W // 2), out2.shape
    assert jnp.allclose(out2, ref2, atol=5e-2, rtol=5e-2), (
        float(jnp.max(jnp.abs(out2 - ref2))))

    print("KERNEL_OK")
</pallas_src>

<mosaic_0001>
module attributes {stable_mosaic.version = 11 : i64} {
  func.func @_gn_lrelu_kernel(%arg0: i32, %arg1: i32, %arg2: memref<1x64x128xf32, #tpu.memory_space<vmem>>, %arg3: memref<1x2x128xf32, #tpu.memory_space<vmem>>, %arg4: memref<1x64x128xf32, #tpu.memory_space<vmem>>) attributes {dimension_semantics = [#tpu.dimension_semantics<parallel>, #tpu.dimension_semantics<parallel>], iteration_bounds = array<i64: 2, 1>, scalar_prefetch = 0 : i64, scratch_operands = 0 : i64, tpu.core_type = #tpu.core_type<tc>, window_params = [{transform_indices = @transform_0, window_bounds = array<i64: 1, 64, 128>}, {transform_indices = @transform_1, window_bounds = array<i64: 1, 2, 128>}, {transform_indices = @transform_2, window_bounds = array<i64: 1, 64, 128>}]} {
    %c0 = arith.constant 0 : index
    %c0_0 = arith.constant 0 : index
    %c0_1 = arith.constant 0 : index
    %0 = vector.load %arg3[%c0, %c0_0, %c0_1] : memref<1x2x128xf32, #tpu.memory_space<vmem>>, vector<1x2x128xf32>
    %1 = vector.shape_cast %0 : vector<1x2x128xf32> to vector<2x128xf32>
    %c0_2 = arith.constant 0 : index
    %c0_3 = arith.constant 0 : index
    %c0_4 = arith.constant 0 : index
    %2 = vector.load %arg2[%c0_2, %c0_3, %c0_4] : memref<1x64x128xf32, #tpu.memory_space<vmem>>, vector<1x64x128xf32>
    %3 = vector.shape_cast %2 : vector<1x64x128xf32> to vector<64x128xf32>
    %4 = vector.extract_strided_slice %1 {offsets = [0, 0], sizes = [1, 128], strides = [1, 1]} : vector<2x128xf32> to vector<1x128xf32>
    %5 = vector.broadcast %4 : vector<1x128xf32> to vector<64x128xf32>
    %6 = arith.mulf %3, %5 : vector<64x128xf32>
    %7 = vector.extract_strided_slice %1 {offsets = [1, 0], sizes = [1, 128], strides = [1, 1]} : vector<2x128xf32> to vector<1x128xf32>
    %8 = vector.broadcast %7 : vector<1x128xf32> to vector<64x128xf32>
    %9 = arith.addf %6, %8 : vector<64x128xf32>
    %cst = arith.constant 0.000000e+00 : f32
    %10 = vector.broadcast %cst : f32 to vector<64x128xf32>
    %11 = arith.cmpf ogt, %9, %10 : vector<64x128xf32>
    %cst_5 = arith.constant 2.000000e-01 : f32
    %12 = vector.broadcast %cst_5 : f32 to vector<64x128xf32>
    %13 = arith.mulf %12, %9 : vector<64x128xf32>
    %14 = arith.select %11, %9, %13 : vector<64x128xi1>, vector<64x128xf32>
    %c0_6 = arith.constant 0 : index
    %c0_7 = arith.constant 0 : index
    %c0_8 = arith.constant 0 : index
    %15 = vector.load %arg4[%c0_6, %c0_7, %c0_8] : memref<1x64x128xf32, #tpu.memory_space<vmem>>, vector<1x64x128xf32>
    %16 = vector.shape_cast %15 : vector<1x64x128xf32> to vector<64x128xf32>
    %17 = vector.shape_cast %14 : vector<64x128xf32> to vector<1x64x128xf32>
    tpu.vector_store %arg4[%c0_6, %c0_7, %c0_8], %17 {strides = array<i32>} : memref<1x64x128xf32, #tpu.memory_space<vmem>>, vector<1x64x128xf32>,
    return
  }
  func.func @transform_0(%arg0: i32, %arg1: i32) -> (i32, i32, i32) {
    %c0_i32 = arith.constant 0 : i32
    %c0_i32_0 = arith.constant 0 : i32
    return %arg0, %arg1, %c0_i32 : i32, i32, i32
  }
  func.func @transform_1(%arg0: i32, %arg1: i32) -> (i32, i32, i32) {
    %c0_i32 = arith.constant 0 : i32
    %c0_i32_0 = arith.constant 0 : i32
    %c0_i32_1 = arith.constant 0 : i32
    return %arg0, %c0_i32, %c0_i32_0 : i32, i32, i32
  }
  func.func @transform_2(%arg0: i32, %arg1: i32) -> (i32, i32, i32) {
    %c0_i32 = arith.constant 0 : i32
    %c0_i32_0 = arith.constant 0 : i32
    return %arg0, %arg1, %c0_i32 : i32, i32, i32
  }
}

module attributes {stable_mosaic.version = 11 : i64} {
  func.func @_conv1_pass1_kernel(%arg0: i32, %arg1: i32, %arg2: memref<1x64x128xbf16, #tpu.memory_space<vmem>>, %arg3: memref<128x128xbf16, #tpu.memory_space<vmem>>, %arg4: memref<1x128xf32, #tpu.memory_space<vmem>>, %arg5: memref<1x128xf32, #tpu.memory_space<vmem>>, %arg6: memref<1x128xf32, #tpu.memory_space<vmem>>, %arg7: memref<128x128xf32, #tpu.memory_space<vmem>>, %arg8: memref<1x64x128xf32, #tpu.memory_space<vmem>>, %arg9: memref<1x2x128xf32, #tpu.memory_space<vmem>>, %arg10: memref<2x128xf32, #tpu.memory_space<vmem>>) attributes {dimension_semantics = [#tpu.dimension_semantics<parallel>, #tpu.dimension_semantics<arbitrary>], iteration_bounds = array<i64: 2, 1>, scalar_prefetch = 0 : i64, scratch_operands = 1 : i64, tpu.core_type = #tpu.core_type<tc>, window_params = [{transform_indices = @transform_0, window_bounds = array<i64: 1, 64, 128>}, {pipeline_mode = #tpu.pipeline_mode<synchronous>, transform_indices = @transform_1, window_bounds = array<i64: 128, 128>}, {pipeline_mode = #tpu.pipeline_mode<synchronous>, transform_indices = @transform_2, window_bounds = array<i64: 1, 128>}, {pipeline_mode = #tpu.pipeline_mode<synchronous>, transform_indices = @transform_3, window_bounds = array<i64: 1, 128>}, {pipeline_mode = #tpu.pipeline_mode<synchronous>, transform_indices = @transform_4, window_bounds = array<i64: 1, 128>}, {pipeline_mode = #tpu.pipeline_mode<synchronous>, transform_indices = @transform_5, window_bounds = array<i64: 128, 128>}, {transform_indices = @transform_6, window_bounds = array<i64: 1, 64, 128>}, {transform_indices = @transform_7, window_bounds = array<i64: 1, 2, 128>}]} {
    %c0_i32 = arith.constant 0 : i32
    %0 = arith.cmpi eq, %arg1, %c0_i32 : i32
    %1 = arith.extui %0 : i1 to i32
    %c0_i32_0 = arith.constant 0 : i32
    %2 = arith.cmpi ne, %1, %c0_i32_0 : i32
    scf.if %2 {
      %cst_18 = arith.constant 0.000000e+00 : f32
      %25 = vector.broadcast %cst_18 : f32 to vector<2x128xf32>
      %c0_19 = arith.constant 0 : index
      %c0_20 = arith.constant 0 : index
      %26 = vector.load %arg10[%c0_19, %c0_20] : memref<2x128xf32, #tpu.memory_space<vmem>>, vector<2x128xf32>
      tpu.vector_store %arg10[%c0_19, %c0_20], %25 {strides = array<i32>} : memref<2x128xf32, #tpu.memory_space<vmem>>, vector<2x128xf32>,
    } else {
    }
    %c0 = arith.constant 0 : index
    %c0_1 = arith.constant 0 : index
    %c0_2 = arith.constant 0 : index
    %3 = vector.load %arg2[%c0, %c0_1, %c0_2] : memref<1x64x128xbf16, #tpu.memory_space<vmem>>, vector<1x64x128xbf16>
    %4 = vector.shape_cast %3 : vector<1x64x128xbf16> to vector<64x128xbf16>
    %c0_3 = arith.constant 0 : index
    %c0_4 = arith.constant 0 : index
    %5 = vector.load %arg3[%c0_3, %c0_4] : memref<128x128xbf16, #tpu.memory_space<vmem>>, vector<128x128xbf16>
    %cst = arith.constant dense<0.000000e+00> : vector<64x128xf32>
    %6 = tpu.matmul %4, %5, %cst {dimension_numbers = #tpu.dot_dimension_numbers<[1], [0], [0], [1], [0, 0, 1, 1], [], []>} : vector<64x128xbf16>, vector<128x128xbf16>, vector<64x128xf32> -> vector<64x128xf32>
    %c0_5 = arith.constant 0 : index
    %c0_6 = arith.constant 0 : index
    %7 = vector.load %arg4[%c0_5, %c0_6] : memref<1x128xf32, #tpu.memory_space<vmem>>, vector<1x128xf32>
    %8 = vector.broadcast %7 : vector<1x128xf32> to vector<64x128xf32>
    %9 = arith.addf %6, %8 : vector<64x128xf32>
    %c0_7 = arith.constant 0 : index
    %c0_8 = arith.constant 0 : index
    %c0_9 = arith.constant 0 : index
    %10 = vector.load %arg8[%c0_7, %c0_8, %c0_9] : memref<1x64x128xf32, #tpu.memory_space<vmem>>, vector<1x64x128xf32>
    %11 = vector.shape_cast %10 : vector<1x64x128xf32> to vector<64x128xf32>
    %12 = vector.shape_cast %9 : vector<64x128xf32> to vector<1x64x128xf32>
    tpu.vector_store %arg8[%c0_7, %c0_8, %c0_9], %12 {strides = array<i32>} : memref<1x64x128xf32, #tpu.memory_space<vmem>>, vector<1x64x128xf32>,
    %c0_10 = arith.constant 0 : index
    %c0_11 = arith.constant 0 : index
    %13 = vector.load %arg10[%c0_10, %c0_11] : memref<2x128xf32, #tpu.memory_space<vmem>>, vector<2x128xf32>
    %cst_12 = arith.constant dense<0.000000e+00> : vector<128xf32>
    %14 = vector.multi_reduction <add>, %9, %cst_12 [0] : vector<64x128xf32> to vector<128xf32>
    %15 = vector.shape_cast %14 : vector<128xf32> to vector<1x128xf32>
    %16 = arith.mulf %9, %9 : vector<64x128xf32>
    %cst_13 = arith.constant dense<0.000000e+00> : vector<128xf32>
    %17 = vector.multi_reduction <add>, %16, %cst_13 [0] : vector<64x128xf32> to vector<128xf32>
    %18 = vector.shape_cast %17 : vector<128xf32> to vector<1x128xf32>
    %19 = tpu.concatenate %15, %18 in 0 : vector<1x128xf32>, vector<1x128xf32> -> vector<2x128xf32>
    %20 = arith.addf %13, %19 : vector<2x128xf32>
    %c0_14 = arith.constant 0 : index
    %c0_15 = arith.constant 0 : index
    %21 = vector.load %arg10[%c0_14, %c0_15] : memref<2x128xf32, #tpu.memory_space<vmem>>, vector<2x128xf32>
    tpu.vector_store %arg10[%c0_14, %c0_15], %20 {strides = array<i32>} : memref<2x128xf32, #tpu.memory_space<vmem>>, vector<2x128xf32>,
    %c0_i32_16 = arith.constant 0 : i32
    %22 = arith.cmpi eq, %arg1, %c0_i32_16 : i32
    %23 = arith.extui %22 : i1 to i32
    %c0_i32_17 = arith.constant 0 : i32
    %24 = arith.cmpi ne, %23, %c0_i32_17 : i32
    scf.if %24 {
      %c0_18 = arith.constant 0 : index
      %c0_19 = arith.constant 0 : index
      %25 = vector.load %arg10[%c0_18, %c0_19] : memref<2x128xf32, #tpu.memory_space<vmem>>, vector<2x128xf32>
      %c0_20 = arith.constant 0 : index
      %c0_21 = arith.constant 0 : index
      %26 = vector.load %arg7[%c0_20, %c0_21] : memref<128x128xf32, #tpu.memory_space<vmem>>, vector<128x128xf32>
      %c0_22 = arith.constant 0 : index
      %c0_23 = arith.constant 0 : index
      %27 = vector.load %arg5[%c0_22, %c0_23] : memref<1x128xf32, #tpu.memory_space<vmem>>, vector<1x128xf32>
      %c0_24 = arith.constant 0 : index
      %c0_25 = arith.constant 0 : index
      %28 = vector.load %arg6[%c0_24, %c0_25] : memref<1x128xf32, #tpu.memory_space<vmem>>, vector<1x128xf32>
      %cst_26 = arith.constant dense<0.000000e+00> : vector<2x128xf32>
      %29 = tpu.matmul %25, %26, %cst_26 {dimension_numbers = #tpu.dot_dimension_numbers<[1], [0], [0], [1], [0, 0, 1, 1], [], []>} : vector<2x128xf32>, vector<128x128xf32>, vector<2x128xf32> -> vector<2x128xf32>
      %30 = vector.extract_strided_slice %29 {offsets = [0, 0], sizes = [1, 128], strides = [1, 1]} : vector<2x128xf32> to vector<1x128xf32>
      %cst_27 = arith.constant 7.812500e-03 : f32
      %31 = vector.broadcast %cst_27 : f32 to vector<1x128xf32>
      %32 = arith.mulf %30, %31 : vector<1x128xf32>
      %33 = vector.extract_strided_slice %29 {offsets = [1, 0], sizes = [1, 128], strides = [1, 1]} : vector<2x128xf32> to vector<1x128xf32>
      %cst_28 = arith.constant 7.812500e-03 : f32
      %34 = vector.broadcast %cst_28 : f32 to vector<1x128xf32>
      %35 = arith.mulf %33, %34 : vector<1x128xf32>
      %36 = arith.mulf %32, %32 : vector<1x128xf32>
      %37 = arith.subf %35, %36 : vector<1x128xf32>
      %cst_29 = arith.constant 0.000000e+00 : f32
      %38 = vector.broadcast %cst_29 : f32 to vector<1x128xf32>
      %39 = arith.maximumf %37, %38 : vector<1x128xf32>
      %cst_30 = arith.constant 9.99999974E-6 : f32
      %40 = vector.broadcast %cst_30 : f32 to vector<1x128xf32>
      %41 = arith.addf %39, %40 : vector<1x128xf32>
      %42 = math.rsqrt %41 : vector<1x128xf32>
      %43 = arith.mulf %27, %42 : vector<1x128xf32>
      %44 = arith.mulf %32, %43 : vector<1x128xf32>
      %45 = arith.subf %28, %44 : vector<1x128xf32>
      %46 = tpu.concatenate %43, %45 in 0 : vector<1x128xf32>, vector<1x128xf32> -> vector<2x128xf32>
      %c0_31 = arith.constant 0 : index
      %c0_32 = arith.constant 0 : index
      %c0_33 = arith.constant 0 : index
      %47 = vector.load %arg9[%c0_31, %c0_32, %c0_33] : memref<1x2x128xf32, #tpu.memory_space<vmem>>, vector<1x2x128xf32>
      %48 = vector.shape_cast %47 : vector<1x2x128xf32> to vector<2x128xf32>
      %49 = vector.shape_cast %46 : vector<2x128xf32> to vector<1x2x128xf32>
      tpu.vector_store %arg9[%c0_31, %c0_32, %c0_33], %49 {strides = array<i32>} : memref<1x2x128xf32, #tpu.memory_space<vmem>>, vector<1x2x128xf32>,
    } else {
    }
    return
  }
  func.func @transform_0(%arg0: i32, %arg1: i32) -> (i32, i32, i32) {
    %c0_i32 = arith.constant 0 : i32
    %c0_i32_0 = arith.constant 0 : i32
    return %arg0, %arg1, %c0_i32 : i32, i32, i32
  }
  func.func @transform_1(%arg0: i32, %arg1: i32) -> (i32, i32) {
    %c0_i32 = arith.constant 0 : i32
    %c0_i32_0 = arith.constant 0 : i32
    %c0_i32_1 = arith.constant 0 : i32
    return %c0_i32, %c0_i32_0 : i32, i32
  }
  func.func @transform_2(%arg0: i32, %arg1: i32) -> (i32, i32) {
    %c0_i32 = arith.constant 0 : i32
    %c0_i32_0 = arith.constant 0 : i32
    %c0_i32_1 = arith.constant 0 : i32
    return %c0_i32, %c0_i32_0 : i32, i32
  }
  func.func @transform_3(%arg0: i32, %arg1: i32) -> (i32, i32) {
    %c0_i32 = arith.constant 0 : i32
    %c0_i32_0 = arith.constant 0 : i32
    %c0_i32_1 = arith.constant 0 : i32
    return %c0_i32, %c0_i32_0 : i32, i32
  }
  func.func @transform_4(%arg0: i32, %arg1: i32) -> (i32, i32) {
    %c0_i32 = arith.constant 0 : i32
    %c0_i32_0 = arith.constant 0 : i32
    %c0_i32_1 = arith.constant 0 : i32
    return %c0_i32, %c0_i32_0 : i32, i32
  }
  func.func @transform_5(%arg0: i32, %arg1: i32) -> (i32, i32) {
    %c0_i32 = arith.constant 0 : i32
    %c0_i32_0 = arith.constant 0 : i32
    %c0_i32_1 = arith.constant 0 : i32
    return %c0_i32, %c0_i32_0 : i32, i32
  }
  func.func @transform_6(%arg0: i32, %arg1: i32) -> (i32, i32, i32) {
    %c0_i32 = arith.constant 0 : i32
    %c0_i32_0 = arith.constant 0 : i32
    return %arg0, %arg1, %c0_i32 : i32, i32, i32
  }
  func.func @transform_7(%arg0: i32, %arg1: i32) -> (i32, i32, i32) {
    %c0_i32 = arith.constant 0 : i32
    %c0_i32_0 = arith.constant 0 : i32
    %c0_i32_1 = arith.constant 0 : i32
    return %arg0, %c0_i32, %c0_i32_0 : i32, i32, i32
  }
}

module attributes {stable_mosaic.version = 11 : i64} {
  func.func @_conv2_pass1_kernel(%arg0: i32, %arg1: i32, %arg2: memref<1x1x104x128xf32, #tpu.memory_space<vmem>>, %arg3: memref<9x128x128xbf16, #tpu.memory_space<vmem>>, %arg4: memref<1x128xf32, #tpu.memory_space<vmem>>, %arg5: memref<1x128xf32, #tpu.memory_space<vmem>>, %arg6: memref<1x128xf32, #tpu.memory_space<vmem>>, %arg7: memref<128x128xf32, #tpu.memory_space<vmem>>, %arg8: memref<1x80x1xf32, #tpu.memory_space<vmem>>, %arg9: memref<1x80x128xf32, #tpu.memory_space<vmem>>, %arg10: memref<1x2x128xf32, #tpu.memory_space<vmem>>, %arg11: memref<2x128xf32, #tpu.memory_space<vmem>>) attributes {dimension_semantics = [#tpu.dimension_semantics<parallel>, #tpu.dimension_semantics<arbitrary>], iteration_bounds = array<i64: 2, 1>, scalar_prefetch = 0 : i64, scratch_operands = 1 : i64, tpu.core_type = #tpu.core_type<tc>, window_params = [{transform_indices = @transform_0, window_bounds = array<i64: 1, 1, 104, 128>}, {pipeline_mode = #tpu.pipeline_mode<synchronous>, transform_indices = @transform_1, window_bounds = array<i64: 9, 128, 128>}, {pipeline_mode = #tpu.pipeline_mode<synchronous>, transform_indices = @transform_2, window_bounds = array<i64: 1, 128>}, {pipeline_mode = #tpu.pipeline_mode<synchronous>, transform_indices = @transform_3, window_bounds = array<i64: 1, 128>}, {pipeline_mode = #tpu.pipeline_mode<synchronous>, transform_indices = @transform_4, window_bounds = array<i64: 1, 128>}, {pipeline_mode = #tpu.pipeline_mode<synchronous>, transform_indices = @transform_5, window_bounds = array<i64: 128, 128>}, {pipeline_mode = #tpu.pipeline_mode<synchronous>, transform_indices = @transform_6, window_bounds = array<i64: 1, 80, 1>}, {transform_indices = @transform_7, window_bounds = array<i64: 1, 80, 128>}, {transform_indices = @transform_8, window_bounds = array<i64: 1, 2, 128>}]} {
    %c0_i32 = arith.constant 0 : i32
    %0 = arith.cmpi eq, %arg1, %c0_i32 : i32
    %1 = arith.extui %0 : i1 to i32
    %c0_i32_0 = arith.constant 0 : i32
    %2 = arith.cmpi ne, %1, %c0_i32_0 : i32
    scf.if %2 {
      %cst_74 = arith.constant 0.000000e+00 : f32
      %89 = vector.broadcast %cst_74 : f32 to vector<2x128xf32>
      %c0_75 = arith.constant 0 : index
      %c0_76 = arith.constant 0 : index
      %90 = vector.load %arg11[%c0_75, %c0_76] : memref<2x128xf32, #tpu.memory_space<vmem>>, vector<2x128xf32>
      tpu.vector_store %arg11[%c0_75, %c0_76], %89 {strides = array<i32>} : memref<2x128xf32, #tpu.memory_space<vmem>>, vector<2x128xf32>,
    } else {
    }
    %cst = arith.constant 0.000000e+00 : f32
    %3 = vector.broadcast %cst : f32 to vector<80x128xf32>
    %c0 = arith.constant 0 : index
    %c0_1 = arith.constant 0 : index
    %c0_2 = arith.constant 0 : index
    %c0_3 = arith.constant 0 : index
    %4 = vector.load %arg2[%c0, %c0_1, %c0_2, %c0_3] : memref<1x1x104x128xf32, #tpu.memory_space<vmem>>, vector<1x1x80x128xf32>
    %5 = vector.shape_cast %4 : vector<1x1x80x128xf32> to vector<80x128xf32>
    %6 = arith.truncf %5 : vector<80x128xf32> to vector<80x128xbf16>
    %c0_4 = arith.constant 0 : index
    %c0_5 = arith.constant 0 : index
    %c0_6 = arith.constant 0 : index
    %7 = vector.load %arg3[%c0_4, %c0_5, %c0_6] : memref<9x128x128xbf16, #tpu.memory_space<vmem>>, vector<1x128x128xbf16>
    %8 = vector.shape_cast %7 : vector<1x128x128xbf16> to vector<128x128xbf16>
    %cst_7 = arith.constant dense<0.000000e+00> : vector<80x128xf32>
    %9 = tpu.matmul %6, %8, %cst_7 {dimension_numbers = #tpu.dot_dimension_numbers<[1], [0], [0], [1], [0, 0, 1, 1], [], []>} : vector<80x128xbf16>, vector<128x128xbf16>, vector<80x128xf32> -> vector<80x128xf32>
    %10 = arith.addf %3, %9 : vector<80x128xf32>
    %c0_8 = arith.constant 0 : index
    %c0_9 = arith.constant 0 : index
    %c1 = arith.constant 1 : index
    %c0_10 = arith.constant 0 : index
    %11 = vector.load %arg2[%c0_8, %c0_9, %c1, %c0_10] : memref<1x1x104x128xf32, #tpu.memory_space<vmem>>, vector<1x1x80x128xf32>
    %12 = vector.shape_cast %11 : vector<1x1x80x128xf32> to vector<80x128xf32>
    %13 = arith.truncf %12 : vector<80x128xf32> to vector<80x128xbf16>
    %c1_11 = arith.constant 1 : index
    %c0_12 = arith.constant 0 : index
    %c0_13 = arith.constant 0 : index
    %14 = vector.load %arg3[%c1_11, %c0_12, %c0_13] : memref<9x128x128xbf16, #tpu.memory_space<vmem>>, vector<1x128x128xbf16>
    %15 = vector.shape_cast %14 : vector<1x128x128xbf16> to vector<128x128xbf16>
    %cst_14 = arith.constant dense<0.000000e+00> : vector<80x128xf32>
    %16 = tpu.matmul %13, %15, %cst_14 {dimension_numbers = #tpu.dot_dimension_numbers<[1], [0], [0], [1], [0, 0, 1, 1], [], []>} : vector<80x128xbf16>, vector<128x128xbf16>, vector<80x128xf32> -> vector<80x128xf32>
    %17 = arith.addf %10, %16 : vector<80x128xf32>
    %c0_15 = arith.constant 0 : index
    %c0_16 = arith.constant 0 : index
    %c2 = arith.constant 2 : index
    %c0_17 = arith.constant 0 : index
    %18 = vector.load %arg2[%c0_15, %c0_16, %c2, %c0_17] : memref<1x1x104x128xf32, #tpu.memory_space<vmem>>, vector<1x1x80x128xf32>
    %19 = vector.shape_cast %18 : vector<1x1x80x128xf32> to vector<80x128xf32>
    %20 = arith.truncf %19 : vector<80x128xf32> to vector<80x128xbf16>
    %c2_18 = arith.constant 2 : index
    %c0_19 = arith.constant 0 : index
    %c0_20 = arith.constant 0 : index
    %21 = vector.load %arg3[%c2_18, %c0_19, %c0_20] : memref<9x128x128xbf16, #tpu.memory_space<vmem>>, vector<1x128x128xbf16>
    %22 = vector.shape_cast %21 : vector<1x128x128xbf16> to vector<128x128xbf16>
    %cst_21 = arith.constant dense<0.000000e+00> : vector<80x128xf32>
    %23 = tpu.matmul %20, %22, %cst_21 {dimension_numbers = #tpu.dot_dimension_numbers<[1], [0], [0], [1], [0, 0, 1, 1], [], []>} : vector<80x128xbf16>, vector<128x128xbf16>, vector<80x128xf32> -> vector<80x128xf32>
    %24 = arith.addf %17, %23 : vector<80x128xf32>
    %c0_22 = arith.constant 0 : index
    %c0_23 = arith.constant 0 : index
    %c10 = arith.constant 10 : index
    %c0_24 = arith.constant 0 : index
    %25 = vector.load %arg2[%c0_22, %c0_23, %c10, %c0_24] : memref<1x1x104x128xf32, #tpu.memory_space<vmem>>, vector<1x1x80x128xf32>
    %26 = vector.shape_cast %25 : vector<1x1x80x128xf32> to vector<80x128xf32>
    %27 = arith.truncf %26 : vector<80x128xf32> to vector<80x128xbf16>
    %c3 = arith.constant 3 : index
    %c0_25 = arith.constant 0 : index
    %c0_26 = arith.constant 0 : index
    %28 = vector.load %arg3[%c3, %c0_25, %c0_26] : memref<9x128x128xbf16, #tpu.memory_space<vmem>>, vector<1x128x128xbf16>
    %29 = vector.shape_cast %28 : vector<1x128x128xbf16> to vector<128x128xbf16>
    %cst_27 = arith.constant dense<0.000000e+00> : vector<80x128xf32>
    %30 = tpu.matmul %27, %29, %cst_27 {dimension_numbers = #tpu.dot_dimension_numbers<[1], [0], [0], [1], [0, 0, 1, 1], [], []>} : vector<80x128xbf16>, vector<128x128xbf16>, vector<80x128xf32> -> vector<80x128xf32>
    %31 = arith.addf %24, %30 : vector<80x128xf32>
    %c0_28 = arith.constant 0 : index
    %c0_29 = arith.constant 0 : index
    %c11 = arith.constant 11 : index
    %c0_30 = arith.constant 0 : index
    %32 = vector.load %arg2[%c0_28, %c0_29, %c11, %c0_30] : memref<1x1x104x128xf32, #tpu.memory_space<vmem>>, vector<1x1x80x128xf32>
    %33 = vector.shape_cast %32 : vector<1x1x80x128xf32> to vector<80x128xf32>
    %34 = arith.truncf %33 : vector<80x128xf32> to vector<80x128xbf16>
    %c4 = arith.constant 4 : index
    %c0_31 = arith.constant 0 : index
    %c0_32 = arith.constant 0 : index
    %35 = vector.load %arg3[%c4, %c0_31, %c0_32] : memref<9x128x128xbf16, #tpu.memory_space<vmem>>, vector<1x128x128xbf16>
    %36 = vector.shape_cast %35 : vector<1x128x128xbf16> to vector<128x128xbf16>
    %cst_33 = arith.constant dense<0.000000e+00> : vector<80x128xf32>
    %37 = tpu.matmul %34, %36, %cst_33 {dimension_numbers = #tpu.dot_dimension_numbers<[1], [0], [0], [1], [0, 0, 1, 1], [], []>} : vector<80x128xbf16>, vector<128x128xbf16>, vector<80x128xf32> -> vector<80x128xf32>
    %38 = arith.addf %31, %37 : vector<80x128xf32>
    %c0_34 = arith.constant 0 : index
    %c0_35 = arith.constant 0 : index
    %c12 = arith.constant 12 : index
    %c0_36 = arith.constant 0 : index
    %39 = vector.load %arg2[%c0_34, %c0_35, %c12, %c0_36] : memref<1x1x104x128xf32, #tpu.memory_space<vmem>>, vector<1x1x80x128xf32>
    %40 = vector.shape_cast %39 : vector<1x1x80x128xf32> to vector<80x128xf32>
    %41 = arith.truncf %40 : vector<80x128xf32> to vector<80x128xbf16>
    %c5 = arith.constant 5 : index
    %c0_37 = arith.constant 0 : index
    %c0_38 = arith.constant 0 : index
    %42 = vector.load %arg3[%c5, %c0_37, %c0_38] : memref<9x128x128xbf16, #tpu.memory_space<vmem>>, vector<1x128x128xbf16>
    %43 = vector.shape_cast %42 : vector<1x128x128xbf16> to vector<128x128xbf16>
    %cst_39 = arith.constant dense<0.000000e+00> : vector<80x128xf32>
    %44 = tpu.matmul %41, %43, %cst_39 {dimension_numbers = #tpu.dot_dimension_numbers<[1], [0], [0], [1], [0, 0, 1, 1], [], []>} : vector<80x128xbf16>, vector<128x128xbf16>, vector<80x128xf32> -> vector<80x128xf32>
    %45 = arith.addf %38, %44 : vector<80x128xf32>
    %c0_40 = arith.constant 0 : index
    %c0_41 = arith.constant 0 : index
    %c20 = arith.constant 20 : index
    %c0_42 = arith.constant 0 : index
    %46 = vector.load %arg2[%c0_40, %c0_41, %c20, %c0_42] : memref<1x1x104x128xf32, #tpu.memory_space<vmem>>, vector<1x1x80x128xf32>
    %47 = vector.shape_cast %46 : vector<1x1x80x128xf32> to vector<80x128xf32>
    %48 = arith.truncf %47 : vector<80x128xf32> to vector<80x128xbf16>
    %c6 = arith.constant 6 : index
    %c0_43 = arith.constant 0 : index
    %c0_44 = arith.constant 0 : index
    %49 = vector.load %arg3[%c6, %c0_43, %c0_44] : memref<9x128x128xbf16, #tpu.memory_space<vmem>>, vector<1x128x128xbf16>
    %50 = vector.shape_cast %49 : vector<1x128x128xbf16> to vector<128x128xbf16>
    %cst_45 = arith.constant dense<0.000000e+00> : vector<80x128xf32>
    %51 = tpu.matmul %48, %50, %cst_45 {dimension_numbers = #tpu.dot_dimension_numbers<[1], [0], [0], [1], [0, 0, 1, 1], [], []>} : vector<80x128xbf16>, vector<128x128xbf16>, vector<80x128xf32> -> vector<80x128xf32>
    %52 = arith.addf %45, %51 : vector<80x128xf32>
    %c0_46 = arith.constant 0 : index
    %c0_47 = arith.constant 0 : index
    %c21 = arith.constant 21 : index
    %c0_48 = arith.constant 0 : index
    %53 = vector.load %arg2[%c0_46, %c0_47, %c21, %c0_48] : memref<1x1x104x128xf32, #tpu.memory_space<vmem>>, vector<1x1x80x128xf32>
    %54 = vector.shape_cast %53 : vector<1x1x80x128xf32> to vector<80x128xf32>
    %55 = arith.truncf %54 : vector<80x128xf32> to vector<80x128xbf16>
    %c7 = arith.constant 7 : index
    %c0_49 = arith.constant 0 : index
    %c0_50 = arith.constant 0 : index
    %56 = vector.load %arg3[%c7, %c0_49, %c0_50] : memref<9x128x128xbf16, #tpu.memory_space<vmem>>, vector<1x128x128xbf16>
    %57 = vector.shape_cast %56 : vector<1x128x128xbf16> to vector<128x128xbf16>
    %cst_51 = arith.constant dense<0.000000e+00> : vector<80x128xf32>
    %58 = tpu.matmul %55, %57, %cst_51 {dimension_numbers = #tpu.dot_dimension_numbers<[1], [0], [0], [1], [0, 0, 1, 1], [], []>} : vector<80x128xbf16>, vector<128x128xbf16>, vector<80x128xf32> -> vector<80x128xf32>
    %59 = arith.addf %52, %58 : vector<80x128xf32>
    %c0_52 = arith.constant 0 : index
    %c0_53 = arith.constant 0 : index
    %c22 = arith.constant 22 : index
    %c0_54 = arith.constant 0 : index
    %60 = vector.load %arg2[%c0_52, %c0_53, %c22, %c0_54] : memref<1x1x104x128xf32, #tpu.memory_space<vmem>>, vector<1x1x80x128xf32>
    %61 = vector.shape_cast %60 : vector<1x1x80x128xf32> to vector<80x128xf32>
    %62 = arith.truncf %61 : vector<80x128xf32> to vector<80x128xbf16>
    %c8 = arith.constant 8 : index
    %c0_55 = arith.constant 0 : index
    %c0_56 = arith.constant 0 : index
    %63 = vector.load %arg3[%c8, %c0_55, %c0_56] : memref<9x128x128xbf16, #tpu.memory_space<vmem>>, vector<1x128x128xbf16>
    %64 = vector.shape_cast %63 : vector<1x128x128xbf16> to vector<128x128xbf16>
    %cst_57 = arith.constant dense<0.000000e+00> : vector<80x128xf32>
    %65 = tpu.matmul %62, %64, %cst_57 {dimension_numbers = #tpu.dot_dimension_numbers<[1], [0], [0], [1], [0, 0, 1, 1], [], []>} : vector<80x128xbf16>, vector<128x128xbf16>, vector<80x128xf32> -> vector<80x128xf32>
    %66 = arith.addf %59, %65 : vector<80x128xf32>
    %c0_58 = arith.constant 0 : index
    %c0_59 = arith.constant 0 : index
    %67 = vector.load %arg4[%c0_58, %c0_59] : memref<1x128xf32, #tpu.memory_space<vmem>>, vector<1x128xf32>
    %68 = vector.broadcast %67 : vector<1x128xf32> to vector<80x128xf32>
    %69 = arith.addf %66, %68 : vector<80x128xf32>
    %c0_60 = arith.constant 0 : index
    %c0_61 = arith.constant 0 : index
    %c0_62 = arith.constant 0 : index
    %70 = vector.load %arg9[%c0_60, %c0_61, %c0_62] : memref<1x80x128xf32, #tpu.memory_space<vmem>>, vector<1x80x128xf32>
    %71 = vector.shape_cast %70 : vector<1x80x128xf32> to vector<80x128xf32>
    %72 = vector.shape_cast %69 : vector<80x128xf32> to vector<1x80x128xf32>
    tpu.vector_store %arg9[%c0_60, %c0_61, %c0_62], %72 {strides = array<i32>} : memref<1x80x128xf32, #tpu.memory_space<vmem>>, vector<1x80x128xf32>,
    %c0_63 = arith.constant 0 : index
    %c0_64 = arith.constant 0 : index
    %c0_65 = arith.constant 0 : index
    %73 = vector.load %arg8[%c0_63, %c0_64, %c0_65] : memref<1x80x1xf32, #tpu.memory_space<vmem>>, vector<1x80x1xf32>
    %74 = vector.shape_cast %73 : vector<1x80x1xf32> to vector<80x1xf32>
    %75 = vector.broadcast %74 : vector<80x1xf32> to vector<80x128xf32>
    %76 = arith.mulf %69, %75 : vector<80x128xf32>
    %c0_66 = arith.constant 0 : index
    %c0_67 = arith.constant 0 : index
    %77 = vector.load %arg11[%c0_66, %c0_67] : memref<2x128xf32, #tpu.memory_space<vmem>>, vector<2x128xf32>
    %cst_68 = arith.constant dense<0.000000e+00> : vector<128xf32>
    %78 = vector.multi_reduction <add>, %76, %cst_68 [0] : vector<80x128xf32> to vector<128xf32>
    %79 = vector.shape_cast %78 : vector<128xf32> to vector<1x128xf32>
    %80 = arith.mulf %76, %76 : vector<80x128xf32>
    %cst_69 = arith.constant dense<0.000000e+00> : vector<128xf32>
    %81 = vector.multi_reduction <add>, %80, %cst_69 [0] : vector<80x128xf32> to vector<128xf32>
    %82 = vector.shape_cast %81 : vector<128xf32> to vector<1x128xf32>
    %83 = tpu.concatenate %79, %82 in 0 : vector<1x128xf32>, vector<1x128xf32> -> vector<2x128xf32>
    %84 = arith.addf %77, %83 : vector<2x128xf32>
    %c0_70 = arith.constant 0 : index
    %c0_71 = arith.constant 0 : index
    %85 = vector.load %arg11[%c0_70, %c0_71] : memref<2x128xf32, #tpu.memory_space<vmem>>, vector<2x128xf32>
    tpu.vector_store %arg11[%c0_70, %c0_71], %84 {strides = array<i32>} : memref<2x128xf32, #tpu.memory_space<vmem>>, vector<2x128xf32>,
    %c0_i32_72 = arith.constant 0 : i32
    %86 = arith.cmpi eq, %arg1, %c0_i32_72 : i32
    %87 = arith.extui %86 : i1 to i32
    %c0_i32_73 = arith.constant 0 : i32
    %88 = arith.cmpi ne, %87, %c0_i32_73 : i32
    scf.if %88 {
      %c0_74 = arith.constant 0 : index
      %c0_75 = arith.constant 0 : index
      %89 = vector.load %arg11[%c0_74, %c0_75] : memref<2x128xf32, #tpu.memory_space<vmem>>, vector<2x128xf32>
      %c0_76 = arith.constant 0 : index
      %c0_77 = arith.constant 0 : index
      %90 = vector.load %arg7[%c0_76, %c0_77] : memref<128x128xf32, #tpu.memory_space<vmem>>, vector<128x128xf32>
      %c0_78 = arith.constant 0 : index
      %c0_79 = arith.constant 0 : index
      %91 = vector.load %arg5[%c0_78, %c0_79] : memref<1x128xf32, #tpu.memory_space<vmem>>, vector<1x128xf32>
      %c0_80 = arith.constant 0 : index
      %c0_81 = arith.constant 0 : index
      %92 = vector.load %arg6[%c0_80, %c0_81] : memref<1x128xf32, #tpu.memory_space<vmem>>, vector<1x128xf32>
      %cst_82 = arith.constant dense<0.000000e+00> : vector<2x128xf32>
      %93 = tpu.matmul %89, %90, %cst_82 {dimension_numbers = #tpu.dot_dimension_numbers<[1], [0], [0], [1], [0, 0, 1, 1], [], []>} : vector<2x128xf32>, vector<128x128xf32>, vector<2x128xf32> -> vector<2x128xf32>
      %94 = vector.extract_strided_slice %93 {offsets = [0, 0], sizes = [1, 128], strides = [1, 1]} : vector<2x128xf32> to vector<1x128xf32>
      %cst_83 = arith.constant 7.812500e-03 : f32
      %95 = vector.broadcast %cst_83 : f32 to vector<1x128xf32>
      %96 = arith.mulf %94, %95 : vector<1x128xf32>
      %97 = vector.extract_strided_slice %93 {offsets = [1, 0], sizes = [1, 128], strides = [1, 1]} : vector<2x128xf32> to vector<1x128xf32>
      %cst_84 = arith.constant 7.812500e-03 : f32
      %98 = vector.broadcast %cst_84 : f32 to vector<1x128xf32>
      %99 = arith.mulf %97, %98 : vector<1x128xf32>
      %100 = arith.mulf %96, %96 : vector<1x128xf32>
      %101 = arith.subf %99, %100 : vector<1x128xf32>
      %cst_85 = arith.constant 0.000000e+00 : f32
      %102 = vector.broadcast %cst_85 : f32 to vector<1x128xf32>
      %103 = arith.maximumf %101, %102 : vector<1x128xf32>
      %cst_86 = arith.constant 9.99999974E-6 : f32
      %104 = vector.broadcast %cst_86 : f32 to vector<1x128xf32>
      %105 = arith.addf %103, %104 : vector<1x128xf32>
      %106 = math.rsqrt %105 : vector<1x128xf32>
      %107 = arith.mulf %91, %106 : vector<1x128xf32>
      %108 = arith.mulf %96, %107 : vector<1x128xf32>
      %109 = arith.subf %92, %108 : vector<1x128xf32>
      %110 = tpu.concatenate %107, %109 in 0 : vector<1x128xf32>, vector<1x128xf32> -> vector<2x128xf32>
      %c0_87 = arith.constant 0 : index
      %c0_88 = arith.constant 0 : index
      %c0_89 = arith.constant 0 : index
      %111 = vector.load %arg10[%c0_87, %c0_88, %c0_89] : memref<1x2x128xf32, #tpu.memory_space<vmem>>, vector<1x2x128xf32>
      %112 = vector.shape_cast %111 : vector<1x2x128xf32> to vector<2x128xf32>
      %113 = vector.shape_cast %110 : vector<2x128xf32> to vector<1x2x128xf32>
      tpu.vector_store %arg10[%c0_87, %c0_88, %c0_89], %113 {strides = array<i32>} : memref<1x2x128xf32, #tpu.memory_space<vmem>>, vector<1x2x128xf32>,
    } else {
    }
    return
  }
  func.func @transform_0(%arg0: i32, %arg1: i32) -> (i32, i32, i32, i32) {
    %c0_i32 = arith.constant 0 : i32
    %c0_i32_0 = arith.constant 0 : i32
    %c0_i32_1 = arith.constant 0 : i32
    return %arg0, %arg1, %c0_i32, %c0_i32_0 : i32, i32, i32, i32
  }
  func.func @transform_1(%arg0: i32, %arg1: i32) -> (i32, i32, i32) {
    %c0_i32 = arith.constant 0 : i32
    %c0_i32_0 = arith.constant 0 : i32
    %c0_i32_1 = arith.constant 0 : i32
    %c0_i32_2 = arith.constant 0 : i32
    return %c0_i32, %c0_i32_0, %c0_i32_1 : i32, i32, i32
  }
  func.func @transform_2(%arg0: i32, %arg1: i32) -> (i32, i32) {
    %c0_i32 = arith.constant 0 : i32
    %c0_i32_0 = arith.constant 0 : i32
    %c0_i32_1 = arith.constant 0 : i32
    return %c0_i32, %c0_i32_0 : i32, i32
  }
  func.func @transform_3(%arg0: i32, %arg1: i32) -> (i32, i32) {
    %c0_i32 = arith.constant 0 : i32
    %c0_i32_0 = arith.constant 0 : i32
    %c0_i32_1 = arith.constant 0 : i32
    return %c0_i32, %c0_i32_0 : i32, i32
  }
  func.func @transform_4(%arg0: i32, %arg1: i32) -> (i32, i32) {
    %c0_i32 = arith.constant 0 : i32
    %c0_i32_0 = arith.constant 0 : i32
    %c0_i32_1 = arith.constant 0 : i32
    return %c0_i32, %c0_i32_0 : i32, i32
  }
  func.func @transform_5(%arg0: i32, %arg1: i32) -> (i32, i32) {
    %c0_i32 = arith.constant 0 : i32
    %c0_i32_0 = arith.constant 0 : i32
    %c0_i32_1 = arith.constant 0 : i32
    return %c0_i32, %c0_i32_0 : i32, i32
  }
  func.func @transform_6(%arg0: i32, %arg1: i32) -> (i32, i32, i32) {
    %c0_i32 = arith.constant 0 : i32
    %c0_i32_0 = arith.constant 0 : i32
    %c0_i32_1 = arith.constant 0 : i32
    %c0_i32_2 = arith.constant 0 : i32
    return %c0_i32, %c0_i32_0, %c0_i32_1 : i32, i32, i32
  }
  func.func @transform_7(%arg0: i32, %arg1: i32) -> (i32, i32, i32) {
    %c0_i32 = arith.constant 0 : i32
    %c0_i32_0 = arith.constant 0 : i32
    return %arg0, %arg1, %c0_i32 : i32, i32, i32
  }
  func.func @transform_8(%arg0: i32, %arg1: i32) -> (i32, i32, i32) {
    %c0_i32 = arith.constant 0 : i32
    %c0_i32_0 = arith.constant 0 : i32
    %c0_i32_1 = arith.constant 0 : i32
    return %arg0, %c0_i32, %c0_i32_0 : i32, i32, i32
  }
}

module attributes {stable_mosaic.version = 11 : i64} {
  func.func @_gn_lrelu_kernel(%arg0: i32, %arg1: i32, %arg2: memref<1x80x128xf32, #tpu.memory_space<vmem>>, %arg3: memref<1x2x128xf32, #tpu.memory_space<vmem>>, %arg4: memref<1x80x128xf32, #tpu.memory_space<vmem>>) attributes {dimension_semantics = [#tpu.dimension_semantics<parallel>, #tpu.dimension_semantics<parallel>], iteration_bounds = array<i64: 2, 1>, scalar_prefetch = 0 : i64, scratch_operands = 0 : i64, tpu.core_type = #tpu.core_type<tc>, window_params = [{transform_indices = @transform_0, window_bounds = array<i64: 1, 80, 128>}, {transform_indices = @transform_1, window_bounds = array<i64: 1, 2, 128>}, {transform_indices = @transform_2, window_bounds = array<i64: 1, 80, 128>}]} {
    %c0 = arith.constant 0 : index
    %c0_0 = arith.constant 0 : index
    %c0_1 = arith.constant 0 : index
    %0 = vector.load %arg3[%c0, %c0_0, %c0_1] : memref<1x2x128xf32, #tpu.memory_space<vmem>>, vector<1x2x128xf32>
    %1 = vector.shape_cast %0 : vector<1x2x128xf32> to vector<2x128xf32>
    %c0_2 = arith.constant 0 : index
    %c0_3 = arith.constant 0 : index
    %c0_4 = arith.constant 0 : index
    %2 = vector.load %arg2[%c0_2, %c0_3, %c0_4] : memref<1x80x128xf32, #tpu.memory_space<vmem>>, vector<1x80x128xf32>
    %3 = vector.shape_cast %2 : vector<1x80x128xf32> to vector<80x128xf32>
    %4 = vector.extract_strided_slice %1 {offsets = [0, 0], sizes = [1, 128], strides = [1, 1]} : vector<2x128xf32> to vector<1x128xf32>
    %5 = vector.broadcast %4 : vector<1x128xf32> to vector<80x128xf32>
    %6 = arith.mulf %3, %5 : vector<80x128xf32>
    %7 = vector.extract_strided_slice %1 {offsets = [1, 0], sizes = [1, 128], strides = [1, 1]} : vector<2x128xf32> to vector<1x128xf32>
    %8 = vector.broadcast %7 : vector<1x128xf32> to vector<80x128xf32>
    %9 = arith.addf %6, %8 : vector<80x128xf32>
    %cst = arith.constant 0.000000e+00 : f32
    %10 = vector.broadcast %cst : f32 to vector<80x128xf32>
    %11 = arith.cmpf ogt, %9, %10 : vector<80x128xf32>
    %cst_5 = arith.constant 2.000000e-01 : f32
    %12 = vector.broadcast %cst_5 : f32 to vector<80x128xf32>
    %13 = arith.mulf %12, %9 : vector<80x128xf32>
    %14 = arith.select %11, %9, %13 : vector<80x128xi1>, vector<80x128xf32>
    %c0_6 = arith.constant 0 : index
    %c0_7 = arith.constant 0 : index
    %c0_8 = arith.constant 0 : index
    %15 = vector.load %arg4[%c0_6, %c0_7, %c0_8] : memref<1x80x128xf32, #tpu.memory_space<vmem>>, vector<1x80x128xf32>
    %16 = vector.shape_cast %15 : vector<1x80x128xf32> to vector<80x128xf32>
    %17 = vector.shape_cast %14 : vector<80x128xf32> to vector<1x80x128xf32>
    tpu.vector_store %arg4[%c0_6, %c0_7, %c0_8], %17 {strides = array<i32>} : memref<1x80x128xf32, #tpu.memory_space<vmem>>, vector<1x80x128xf32>,
    return
  }
  func.func @transform_0(%arg0: i32, %arg1: i32) -> (i32, i32, i32) {
    %c0_i32 = arith.constant 0 : i32
    %c0_i32_0 = arith.constant 0 : i32
    return %arg0, %arg1, %c0_i32 : i32, i32, i32
  }
  func.func @transform_1(%arg0: i32, %arg1: i32) -> (i32, i32, i32) {
    %c0_i32 = arith.constant 0 : i32
    %c0_i32_0 = arith.constant 0 : i32
    %c0_i32_1 = arith.constant 0 : i32
    return %arg0, %c0_i32, %c0_i32_0 : i32, i32, i32
  }
  func.func @transform_2(%arg0: i32, %arg1: i32) -> (i32, i32, i32) {
    %c0_i32 = arith.constant 0 : i32
    %c0_i32_0 = arith.constant 0 : i32
    return %arg0, %arg1, %c0_i32 : i32, i32, i32
  }
}

</mosaic_0001>

<bundles_post_ra>
// kernel: tile.8
= control target key start
LH: loop header
LB: loop body
LE: loop exit
PB: predicated region body
PF: predicated region fallthrough
CT: control target
= control target key end

     0   :  { %s22_s0 = inlined_call_operand.vmem [shape: f32[10], index: 0, kind: input, shape index: {}]   ;;  %s23_s1 = inlined_call_operand.vmem [shape: f32[8,10], index: 1, kind: output, shape index: {}]  }
   0x1   :  { %v4_v0 = vld [vmem:[%s22_s0] ss:$0 sm:$0xff] }
   0x2   :  { %5 = vst [vmem:[%s23_s1] sm:$0xff] %v4_v0 }

// kernel: tile.0
= control target key start
LH: loop header
LB: loop body
LE: loop exit
PB: predicated region body
PF: predicated region fallthrough
CT: control target
= control target key end

     0   :  { %s140_s10 = smov 125   ;;  %vm3_vm0 = vcmask 7168   ;;  %s141_s11 = smov 127   ;;  %s295_s0 = inlined_call_operand.vmem [shape: f32[8,10], index: 0, kind: input, shape index: {}]   ;;  %s296_s1 = inlined_call_operand.vmem [shape: f32[1,80,1], index: 1, kind: output, shape index: {}]  }
   0x1   :  { %v29_v0 = vld.sshfl [vmem:[%s295_s0] sm:$0xff pattern:$0x62514703]   ;;  %s143_s18 = smov 124   ;;  %s144_s19 = smov 126  }
   0x2   :  { %v5_v1 = vld.sshfl [vmem:[%s295_s0] sm:$0xff pattern:$0x36251470]   ;;  %30 = vrot.lane.b32.xlu1 %v29_v0, %s140_s10  ;;  %s145_s20 = smov 122   ;;  %s146_s21 = smov 120  }
   0x3   :  { %6 = vrot.lane.b32.xlu0 %v5_v1, %s141_s11  ;;  %v2_v2 = vld [vmem:[%s295_s0] sm:$0xff]   ;;  %s147_s22 = smov 121   ;;  %s148_s23 = smov 119  }
   0x4   :  { %4 = vst.msk [vmem:[%s296_s1] ss:$10 sm:$0xff] %vm3_vm0, %v2_v2   ;;  %v41_v3 = vld.sshfl [vmem:[%s295_s0] sm:$0xff pattern:$0x25147036]   ;;  %s142_s0 = smov 123  }
   0x5   :  { %52 = vrot.lane.b32.xlu2 %v41_v3, %s142_s0 }
   0xa   :  { %42 = vrot.lane.b32.xlu1 %v41_v3, %s143_s18 }
   0xb   :  { %18 = vrot.lane.b32.xlu0 %v29_v0, %s144_s19 }
   0xd   :  { %62 = vrot.lane.b32.xlu2 %v41_v3, %s145_s20 }
  0x12   :  { %82 = vrot.lane.b32.xlu1 %v41_v3, %s146_s21 }
  0x13   :  { %72 = vrot.lane.b32.xlu0 %v41_v3, %s147_s22 }
  0x15   :  { %92 = vrot.lane.b32.xlu2 %v41_v3, %s148_s23 }
  0x5f   :  { %v53_v4 = vpop.permute.xlu2 %52  }
  0x60   :  { %116 = vst.msk [vmem:[%s296_s1 + $0x41] ss:$-30 sm:$0x7] %vm3_vm0, %v53_v4  }
  0x61   :  { %117 = vst.msk [vmem:[%s296_s1 + $0xa5] ss:$-30 sm:$0x38] %vm3_vm0, %v53_v4  }
  0x62   :  { %118 = vst.msk [vmem:[%s296_s1 + $0xeb] ss:$-30 sm:$0xc0] %vm3_vm0, %v53_v4  }
  0x67   :  { %v63_v5 = vpop.permute.xlu2 %62  }
  0x68   :  { %119 = vst.msk [vmem:[%s296_s1 + $0x42] ss:$-30 sm:$0x7] %vm3_vm0, %v63_v5  }
  0x69   :  { %120 = vst.msk [vmem:[%s296_s1 + $0xa6] ss:$-30 sm:$0x38] %vm3_vm0, %v63_v5  }
  0x6a   :  { %121 = vst.msk [vmem:[%s296_s1 + $0xec] ss:$-30 sm:$0xc0] %vm3_vm0, %v63_v5  }
  0x6f   :  { %v93_v6 = vpop.permute.xlu2 %92  }
  0x70   :  { %128 = vst.msk [vmem:[%s296_s1 + $0x45] ss:$-30 sm:$0x7] %vm3_vm0, %v93_v6  }
  0x71   :  { %129 = vst.msk [vmem:[%s296_s1 + $0xa9] ss:$-30 sm:$0x38] %vm3_vm0, %v93_v6  }
  0x72   :  { %130 = vst.msk [vmem:[%s296_s1 + $0xef] ss:$-30 sm:$0xc0] %vm3_vm0, %v93_v6  }
  0x74   :  { %v31_v7 = vpop.permute.xlu1 %30  }
  0x75   :  { %v7_v8 = vpop.permute.xlu0 %6   ;;  %109 = vst.msk [vmem:[%s296_s1 + $0x21] ss:$-30 sm:$0x3] %vm3_vm0, %v31_v7  }
  0x76   :  { %110 = vst.msk [vmem:[%s296_s1 + $0x85] ss:$-30 sm:$0x1c] %vm3_vm0, %v31_v7  }
  0x77   :  { %111 = vst.msk [vmem:[%s296_s1 + $0xcb] ss:$-30 sm:$0x60] %vm3_vm0, %v31_v7  }
  0x78   :  { %112 = vst.msk [vmem:[%s296_s1 + $0x38] sm:$0x80] %vm3_vm0, %v31_v7  }
  0x79   :  { %101 = vst.msk [vmem:[%s296_s1 + $0x1] ss:$70 sm:$0x3] %vm3_vm0, %v7_v8  }
  0x7a   :  { %102 = vst.msk [vmem:[%s296_s1 + $0x65] ss:$-30 sm:$0xc] %vm3_vm0, %v7_v8  }
  0x7b   :  { %103 = vst.msk [vmem:[%s296_s1 + $0xab] ss:$-30 sm:$0x30] %vm3_vm0, %v7_v8  }
  0x7c   :  { %104 = vst.msk [vmem:[%s296_s1 + $0xf1] ss:$-30 sm:$0xc0] %vm3_vm0, %v7_v8   ;;  %v43_v9 = vpop.permute.xlu1 %42  }
  0x7d   :  { %v19_v10 = vpop.permute.xlu0 %18   ;;  %113 = vst.msk [vmem:[%s296_s1 + $0x40] ss:$-30 sm:$0x7] %vm3_vm0, %v43_v9  }
  0x7e   :  { %114 = vst.msk [vmem:[%s296_s1 + $0xa4] ss:$-30 sm:$0x38] %vm3_vm0, %v43_v9  }
  0x7f   :  { %115 = vst.msk [vmem:[%s296_s1 + $0xea] ss:$-30 sm:$0xc0] %vm3_vm0, %v43_v9  }
  0x80   :  { %105 = vst.msk [vmem:[%s296_s1 + $0x20] ss:$-30 sm:$0x3] %vm3_vm0, %v19_v10  }
  0x81   :  { %106 = vst.msk [vmem:[%s296_s1 + $0x84] ss:$-30 sm:$0x1c] %vm3_vm0, %v19_v10  }
  0x82   :  { %107 = vst.msk [vmem:[%s296_s1 + $0xca] ss:$-30 sm:$0x60] %vm3_vm0, %v19_v10  }
  0x83   :  { %108 = vst.msk [vmem:[%s296_s1 + $0x37] sm:$0x80] %vm3_vm0, %v19_v10  }
  0x84   :  { %v83_v11 = vpop.permute.xlu1 %82  }
  0x85   :  { %v73_v12 = vpop.permute.xlu0 %72   ;;  %125 = vst.msk [vmem:[%s296_s1 + $0x44] ss:$-30 sm:$0x7] %vm3_vm0, %v83_v11  }
  0x86   :  { %126 = vst.msk [vmem:[%s296_s1 + $0xa8] ss:$-30 sm:$0x38] %vm3_vm0, %v83_v11  }
  0x87   :  { %127 = vst.msk [vmem:[%s296_s1 + $0xee] ss:$-30 sm:$0xc0] %vm3_vm0, %v83_v11  }
  0x88   :  { %122 = vst.msk [vmem:[%s296_s1 + $0x43] ss:$-30 sm:$0x7] %vm3_vm0, %v73_v12  }
  0x89   :  { %123 = vst.msk [vmem:[%s296_s1 + $0xa7] ss:$-30 sm:$0x38] %vm3_vm0, %v73_v12  }
  0x8a   :  { %124 = vst.msk [vmem:[%s296_s1 + $0xed] ss:$-30 sm:$0xc0] %vm3_vm0, %v73_v12  }

// kernel: down_block.5
= control target key start
LH: loop header
LB: loop body
LE: loop exit
PB: predicated region body
PF: predicated region fallthrough
CT: control target
= control target key end

     0   :  { %s435_s9 = smov 0   ;;  %s437_s10 = smov 0   ;;  %s489_s0 = inlined_call_operand.vmem [shape: f32[2,64,128], index: 0, kind: input, shape index: {}]   ;;  %s490_s1 = inlined_call_operand.vmem [shape: f32[2,2,128], index: 1, kind: input, shape index: {}]   ;;  %s491_s2 = inlined_call_operand.vmem [shape: f32[2,64,128], index: 2, kind: output, shape index: {}]  }
   0x1   :  { %s439_s11 = smov 0  }
   0x2 LB: > { %s24_s12 = sadd.s32 1, %s414_s10  ;;  %p362_p0 = scmp.ge.s32.totalorder %s418_s11, 1  ;;  %s418_s11 = sphi %s439_s11, %s12_s11   ;;  %s414_s10 = sphi %s437_s10, %s493_s10   ;;  %s410_s9 = sphi %s435_s9, %s492_s9  }
   0x3   : > { %p26_p1 = scmp.ge.s32.totalorder %s24_s12, 2  ;;  %p142_p2 = scmp.lt.s32.totalorder %s418_s11, 3 }
   0x5   : > { %s495_s12 = smov (%p26_p1, %s24_s12), 0  ;;  %p143_p3 = pnand %p362_p0, %p142_p2 }
   0x6   : > { %p177_p4 = scmp.lt.s32.totalorder (!%p143_p3), %s410_s9, 1 }
   0x7   : > { %146 = sbr.rel (%p143_p3) target bundleno = 33 (0x21), region = 28 }
   0xc   : > { %s497_s9 = smov (!%p177_p4, %s410_s9), 1 }
   0xd   : > { %s370_s13 = sshll.u32 %s497_s9, 6  ;;  %s365_s14 = sshll.u32 %s497_s9, 1 }
   0xe   : > { %s184_s17 = scalar_lea.vmem %s489_s0, %s370_s13  ;;  %s189_s20 = scalar_lea.vmem %s490_s1, %s365_s14 }
   0xf   : > { %v200_v0 = vld [vmem:[%s189_s20] sm:$0x3]  ;;  %v202_v2 = vld [vmem:[%s184_s17 + $0x8] sm:$0xff]  ;;  %v203_v5 = vld [vmem:[%s184_s17 + $0x10] sm:$0xff]  ;;  %s470_s23 = scalar_lea.vmem %s491_s2, %s370_s13 }
  0x10   : > { %v201_v1 = vld [vmem:[%s184_s17] sm:$0xff]  ;;  %v209_v3 = vperm.slane %v200_v0, 0  ;;  %v218_v4 = vperm.slane %v200_v0, 1  ;;  %v204_v6 = vld [vmem:[%s184_s17 + $0x18] sm:$0xff]  ;;  %v206_v8 = vld [vmem:[%s184_s17 + $0x28] sm:$0xff] }
  0x11   : > { %v205_v7 = vld [vmem:[%s184_s17 + $0x20] sm:$0xff]  ;;  %v207_v9 = vld [vmem:[%s184_s17 + $0x30] sm:$0xff]  ;;  %v208_v10 = vld [vmem:[%s184_s17 + $0x38] sm:$0xff] }
  0x12   : > { %v210_v11 = vmul.f32 %v209_v3, %v201_v1  ;;  %v211_v12 = vmul.f32 %v209_v3, %v202_v2  ;;  %v212_v13 = vmul.f32 %v209_v3, %v203_v5  ;;  %v213_v14 = vmul.f32 %v209_v3, %v204_v6 }
  0x13   : > { %v214_v15 = vmul.f32 %v209_v3, %v205_v7  ;;  %v215_v16 = vmul.f32 %v209_v3, %v206_v8  ;;  %v216_v17 = vmul.f32 %v209_v3, %v207_v9  ;;  %v217_v18 = vmul.f32 %v209_v3, %v208_v10 }
  0x14   : > { %v219_v19 = vadd.f32 %v218_v4, %v210_v11  ;;  %v220_v20 = vadd.f32 %v218_v4, %v211_v12  ;;  %v221_v21 = vadd.f32 %v218_v4, %v212_v13  ;;  %v222_v22 = vadd.f32 %v218_v4, %v213_v14 }
  0x15   : > { %v223_v23 = vadd.f32 %v218_v4, %v214_v15  ;;  %v224_v24 = vadd.f32 %v218_v4, %v215_v16  ;;  %v225_v25 = vadd.f32 %v218_v4, %v216_v17  ;;  %v226_v26 = vadd.f32 %v218_v4, %v217_v18 }
  0x16   : > { %vm227_vm0 = vcmp.gt.f32.partialorder %v219_v19, 0.0  ;;  %v235_v27 = vmul.f32 0.2, %v219_v19  ;;  %vm228_vm1 = vcmp.gt.f32.partialorder %v220_v20, 0.0  ;;  %v236_v28 = vmul.f32 0.2, %v220_v20 }
  0x17   : > { %vm229_vm2 = vcmp.gt.f32.partialorder %v221_v21, 0.0  ;;  %v237_v29 = vmul.f32 0.2, %v221_v21  ;;  %vm230_vm3 = vcmp.gt.f32.partialorder %v222_v22, 0.0  ;;  %v238_v30 = vmul.f32 0.2, %v222_v22 }
  0x18   : > { %v243_v31 = vsel %vm227_vm0, %v219_v19, %v235_v27  ;;  %v244_v32 = vsel %vm228_vm1, %v220_v20, %v236_v28  ;;  %vm231_vm4 = vcmp.gt.f32.partialorder %v223_v23, 0.0  ;;  %v239_v33 = vmul.f32 0.2, %v223_v23 }
  0x19   : > { %251 = vst [vmem:[%s470_s23] sm:$0xff] %v243_v31  ;;  %v245_v34 = vsel %vm229_vm2, %v221_v21, %v237_v29  ;;  %v246_v35 = vsel %vm230_vm3, %v222_v22, %v238_v30  ;;  %vm232_vm5 = vcmp.gt.f32.partialorder %v224_v24, 0.0  ;;  %v240_v36 = vmul.f32 0.2, %v224_v24 }
  0x1a   : > { %252 = vst [vmem:[%s470_s23 + $0x8] sm:$0xff] %v244_v32  ;;  %v247_v37 = vsel %vm231_vm4, %v223_v23, %v239_v33  ;;  %vm233_vm6 = vcmp.gt.f32.partialorder %v225_v25, 0.0  ;;  %v241_v38 = vmul.f32 0.2, %v225_v25  ;;  %vm234_vm7 = vcmp.gt.f32.partialorder %v226_v26, 0.0 }
  0x1b   : > { %253 = vst [vmem:[%s470_s23 + $0x10] sm:$0xff] %v245_v34  ;;  %v248_v39 = vsel %vm232_vm5, %v224_v24, %v240_v36  ;;  %v242_v40 = vmul.f32 0.2, %v226_v26 }
  0x1c   : > { %254 = vst [vmem:[%s470_s23 + $0x18] sm:$0xff] %v246_v35  ;;  %v249_v41 = vsel %vm233_vm6, %v225_v25, %v241_v38 }
  0x1d   : > { %255 = vst [vmem:[%s470_s23 + $0x20] sm:$0xff] %v247_v37  ;;  %v250_v42 = vsel %vm234_vm7, %v226_v26, %v242_v40 }
  0x1e   : > { %256 = vst [vmem:[%s470_s23 + $0x28] sm:$0xff] %v248_v39 }
  0x1f   : > { %257 = vst [vmem:[%s470_s23 + $0x30] sm:$0xff] %v249_v41 }
  0x20   : > { %258 = vst [vmem:[%s470_s23 + $0x38] sm:$0xff] %v250_v42 }
  0x21 PF: > { %s12_s11 = sadd.s32 1, %s418_s11   ;;  %s492_s9 = smov %s414_s10 }
  0x22   : > { %p9_p5 = scmp.ge.s32.totalorder %s12_s11, 4   ;;  %s493_s10 = smov %s495_s12 }
  0x24   :  { %11 = sbr.rel (!%p9_p5) target bundleno = 2 (0x2), region = 61 }

// kernel: down_block.4
= control target key start
LH: loop header
LB: loop body
LE: loop exit
PB: predicated region body
PF: predicated region fallthrough
CT: control target
= control target key end

     0   :  { %s884_s24 = smov 0   ;;  %s886_s25 = smov 0   ;;  %s1032_s0 = inlined_call_operand.vmem [shape: bf16[2,64,128], index: 0, kind: input, shape index: {}]   ;;  %s1033_s1 = inlined_call_operand.vmem [shape: bf16[128,128], index: 1, kind: input, shape index: {}]   ;;  %s1034_s2 = inlined_call_operand.vmem [shape: f32[1,128], index: 2, kind: input, shape index: {}]   ;;  %s1035_s3 = inlined_call_operand.vmem [shape: f32[1,128], index: 3, kind: input, shape index: {}]   ;;  %s1036_s4 = inlined_call_operand.vmem [shape: f32[1,128], index: 4, kind: input, shape index: {}]   ;;  %s1037_s5 = inlined_call_operand.vmem [shape: f32[128,128], index: 5, kind: input, shape index: {}]   ;;  %s1038_s6 = inlined_call_operand.vmem [shape: f32[2,64,128], index: 6, kind: output, shape index: {0}]   ;;  %s1039_s7 = inlined_call_operand.vmem [shape: f32[2,2,128], index: 7, kind: output, shape index: {1}]  }
   0x1   :  { %s888_s26 = smov 0  }
   0x2 LB: > { %s30_s27 = sadd.s32 1, %s837_s25  ;;  %p705_p0 = scmp.ge.s32.totalorder %s841_s26, 1  ;;  %s841_s26 = sphi %s888_s26, %s18_s26   ;;  %s837_s25 = sphi %s886_s25, %s1041_s25   ;;  %s833_s24 = sphi %s884_s24, %s1040_s24  }
   0x3   : > { %p32_p1 = scmp.ge.s32.totalorder %s30_s27, 2  ;;  %p261_p2 = scmp.lt.s32.totalorder %s841_s26, 3 }
   0x5   : > { %s1043_s27 = smov (%p32_p1, %s30_s27), 0  ;;  %p262_p3 = pnand %p705_p0, %p261_p2 }
   0x6   : > { %p306_p4 = scmp.lt.s32.totalorder (!%p262_p3), %s833_s24, 1 }
   0x7   : > { %265 = sbr.rel (%p262_p3) target bundleno = 403 (0x193), region = 44 }
   0xc   : > { %v774_v0 = vld [vmem:[%s1033_s1 + $0x38] sm:$0xff]  ;;  %v773_v1 = vld [vmem:[%s1033_s1 + $0x30] sm:$0xff]  ;;  %v772_v2 = vld [vmem:[%s1033_s1 + $0x28] sm:$0xff]  ;;  %s1045_s24 = smov (!%p306_p4, %s833_s24), 1  ;;  %v843_v13 = vmov 0.0   ;;  %vm506_vm0 = vcmask 1040384  }
   0xd   : > { %775 = vmatpush.bf16.msra.mxu2 %v774_v0  ;;  %776 = vmatpush.bf16.msra.mxu3 %v774_v0  ;;  %v771_v3 = vld [vmem:[%s1033_s1 + $0x20] sm:$0xff]  ;;  %v770_v4 = vld [vmem:[%s1033_s1 + $0x18] sm:$0xff]  ;;  %v769_v5 = vld [vmem:[%s1033_s1 + $0x10] sm:$0xff]  ;;  %s761_s19 = sshll.u32 %s1045_s24, 5  ;;  %333 = vst [vmem:[#allocation2] sm:$0x3] %v843_v13 }
   0xe   : > { %434 = vmatpush.bf16.msra.mxu0 %v774_v0  ;;  %v768_v6 = vld [vmem:[%s1033_s1 + $0x8] sm:$0xff]  ;;  %v767_v7 = vld [vmem:[%s1033_s1] sm:$0xff]  ;;  %s313_s28 = scalar_lea.vmem %s1032_s0, %s761_s19  ;;  %v529_v12 = vld [vmem:[%s1037_s5 + $0x78] sm:$0xff]  ;;  %s762_s10 = sshll.u32 %s1045_s24, 6 }
   0xf   : > { %v764_v8 = vld [vmem:[%s313_s28 + $0x8] sm:$0xff]  ;;  %v765_v9 = vld [vmem:[%s313_s28 + $0x10] sm:$0xff]  ;;  %v763_v10 = vld [vmem:[%s313_s28] sm:$0xff]  ;;  %532 = vmatpush.msra.mxu1 %v529_v12  ;;  %s955_s17 = scalar_lea.vmem %s1038_s6, %s762_s10  ;;  %s710_s10 = sshll.u32 %s1045_s24, 1 }
  0x10   : > { %v766_v11 = vld [vmem:[%s313_s28 + $0x18] sm:$0xff]  ;;  %v528_v14 = vld [vmem:[%s1037_s5 + $0x70] sm:$0xff]  ;;  %v946_v15 = vld [vmem:[%s1034_s2] ss:$0 sm:$0xff]  ;;  %s328_s13 = scalar_lea.vmem %s1039_s7, %s710_s10 }
  0x11   : > { %777 = vmatpush.bf16.msra.mxu2 %v773_v1  ;;  %778 = vmatpush.bf16.msra.mxu3 %v773_v1  ;;  %v527_v17 = vld [vmem:[%s1037_s5 + $0x68] sm:$0xff]  ;;  %v526_v19 = vld [vmem:[%s1037_s5 + $0x60] sm:$0xff]  ;;  %v525_v20 = vld [vmem:[%s1037_s5 + $0x58] sm:$0xff] }
  0x12   : > { %435 = vmatpush.bf16.msra.mxu0 %v773_v1  ;;  %533 = vmatpush.msra.mxu1 %v528_v14  ;;  %v524_v25 = vld [vmem:[%s1037_s5 + $0x50] sm:$0xff]  ;;  %v523_v27 = vld [vmem:[%s1037_s5 + $0x48] sm:$0xff]  ;;  %v522_v30 = vld [vmem:[%s1037_s5 + $0x40] sm:$0xff] }
  0x13   : > { %v521_v33 = vld [vmem:[%s1037_s5 + $0x38] sm:$0xff]  ;;  %v520_v40 = vld [vmem:[%s1037_s5 + $0x30] sm:$0xff]  ;;  %v519_v42 = vld [vmem:[%s1037_s5 + $0x28] sm:$0xff] }
  0x14   : > { %534 = vmatpush.msra.mxu1 %v527_v17  ;;  %v518_v45 = vld [vmem:[%s1037_s5 + $0x20] sm:$0xff]  ;;  %v517_v46 = vld [vmem:[%s1037_s5 + $0x18] sm:$0xff]  ;;  %v516_v48 = vld [vmem:[%s1037_s5 + $0x10] sm:$0xff] }
  0x15   : > { %779 = vmatpush.bf16.msra.mxu2 %v772_v2  ;;  %780 = vmatpush.bf16.msra.mxu3 %v772_v2  ;;  %v515_v52 = vld [vmem:[%s1037_s5 + $0x8] sm:$0xff]  ;;  %v514_v55 = vld [vmem:[%s1037_s5] sm:$0xff] }
  0x16   : > { %436 = vmatpush.bf16.msra.mxu0 %v772_v2  ;;  %535 = vmatpush.msra.mxu1 %v526_v19  ;;  %v471_v14 = vld [vmem:[#allocation2] sm:$0x3] }
  0x18   : > { %536 = vmatpush.msra.mxu1 %v525_v20 }
  0x19   : > { %781 = vmatpush.bf16.msra.mxu2 %v771_v3  ;;  %782 = vmatpush.bf16.msra.mxu3 %v771_v3 }
  0x1a   : > { %437 = vmatpush.bf16.msra.mxu0 %v771_v3  ;;  %537 = vmatpush.msra.mxu1 %v524_v25 }
  0x1c   : > { %538 = vmatpush.msra.mxu1 %v523_v27 }
  0x1d   : > { %783 = vmatpush.bf16.msra.mxu2 %v770_v4  ;;  %784 = vmatpush.bf16.msra.mxu3 %v770_v4 }
  0x1e   : > { %438 = vmatpush.bf16.msra.mxu0 %v770_v4  ;;  %539 = vmatpush.msra.mxu1 %v522_v30 }
  0x20   : > { %540 = vmatpush.msra.mxu1 %v521_v33 }
  0x21   : > { %785 = vmatpush.bf16.msra.mxu2 %v769_v5  ;;  %786 = vmatpush.bf16.msra.mxu3 %v769_v5 }
  0x22   : > { %439 = vmatpush.bf16.msra.mxu0 %v769_v5  ;;  %541 = vmatpush.msra.mxu1 %v520_v40 }
  0x24   : > { %542 = vmatpush.msra.mxu1 %v519_v42 }
  0x25   : > { %787 = vmatpush.bf16.msra.mxu2 %v768_v6  ;;  %788 = vmatpush.bf16.msra.mxu3 %v768_v6 }
  0x26   : > { %440 = vmatpush.bf16.msra.mxu0 %v768_v6  ;;  %543 = vmatpush.msra.mxu1 %v518_v45 }
  0x28   : > { %544 = vmatpush.msra.mxu1 %v517_v46 }
  0x29   : > { %789 = vmatpush.bf16.msra.mxu2 %v767_v7  ;;  %790 = vmatpush.bf16.msra.mxu3 %v767_v7 }
  0x2a   : > { %441 = vmatpush.bf16.msra.mxu0 %v767_v7  ;;  %545 = vmatpush.msra.mxu1 %v516_v48 }
  0x2c   : > { %447 = vmatmul.bf16.vlgmr.msra.gmra.mxu2 %v764_v8  ;;  %452 = vmatmul.bf16.vlgmr.msra.gmra.mxu3 %v765_v9 }
  0x2d   : > { %442 = vmatmul.bf16.vlgmr.msra.gmra.mxu0 %v763_v10  ;;  %546 = vmatpush.msra.mxu1 %v515_v52 }
  0x2f   : > { %547 = vmatpush.msra.mxu1 %v514_v55 }
  0x3c   : > { %457 = vmatmul.bf16.gmra.mxu3 %v766_v11 }
  0xaa   : > { %v443_v16 = vpop.f32.mrf.mxu0 }
  0xab   : > { %v444_v18 = vadd.f32 %v946_v15, %v443_v16 }
  0xad   : > { %463 = vst [vmem:[%s955_s17] sm:$0xff] %v444_v18  ;;  %v485_v29 = vmul.f32 %v444_v18, %v444_v18 }
  0xaf   : > { %v448_v21 = vpop.f32.mrf.mxu2  ;;  %v453_v22 = vpop.f32.mrf.mxu3 }
  0xb0   : > { %v449_v23 = vadd.f32 %v946_v15, %v448_v21  ;;  %v454_v24 = vadd.f32 %v946_v15, %v453_v22 }
  0xb2   : > { %465 = vst [vmem:[%s955_s17 + $0x10] sm:$0xff] %v449_v23  ;;  %v445_v26 = vpop.f32.mrf.mxu0  ;;  %v487_v36 = vmul.f32 %v449_v23, %v449_v23  ;;  %v489_v53 = vmul.f32 %v454_v24, %v454_v24 }
  0xb3   : > { %467 = vst [vmem:[%s955_s17 + $0x20] sm:$0xff] %v454_v24  ;;  %v446_v28 = vadd.f32 %v946_v15, %v445_v26 }
  0xb5   : > { %464 = vst [vmem:[%s955_s17 + $0x8] sm:$0xff] %v446_v28  ;;  %v486_v31 = vmul.f32 %v446_v28, %v446_v28  ;;  %v472_v32 = vadd.f32 %v446_v28, %v444_v18 }
  0xb7   : > { %v450_v34 = vpop.f32.mrf.mxu2  ;;  %v455_v35 = vpop.f32.mrf.mxu3  ;;  %v493_v37 = vadd.f32 %v486_v31, %v485_v29  ;;  %v473_v41 = vadd.f32 %v472_v32, %v449_v23 }
  0xb8   : > { %v451_v38 = vadd.f32 %v946_v15, %v450_v34  ;;  %v456_v39 = vadd.f32 %v946_v15, %v455_v35  ;;  %v530_v34 = vld [vmem:[%s1035_s3] sm:$0x1] }
  0xb9   : > { %v494_v44 = vadd.f32 %v493_v37, %v487_v36  ;;  %v531_v37 = vld [vmem:[%s1036_s4] sm:$0x1] }
  0xba   : > { %466 = vst [vmem:[%s955_s17 + $0x18] sm:$0xff] %v451_v38  ;;  %v488_v43 = vmul.f32 %v451_v38, %v451_v38  ;;  %v474_v47 = vadd.f32 %v473_v41, %v451_v38  ;;  %v490_v58 = vmul.f32 %v456_v39, %v456_v39 }
  0xbb   : > { %468 = vst [vmem:[%s955_s17 + $0x28] sm:$0xff] %v456_v39 }
  0xbc   : > { %v495_v50 = vadd.f32 %v494_v44, %v488_v43  ;;  %v475_v54 = vadd.f32 %v474_v47, %v454_v24 }
  0xbe   : > { %v496_v56 = vadd.f32 %v495_v50, %v489_v53  ;;  %v476_v57 = vadd.f32 %v475_v54, %v456_v39 }
  0xbf   : > { %v458_v49 = vpop.f32.mrf.mxu3 }
  0xc0   : > { %v459_v51 = vadd.f32 %v946_v15, %v458_v49  ;;  %v497_v61 = vadd.f32 %v496_v56, %v490_v58 }
  0xc2   : > { %469 = vst [vmem:[%s955_s17 + $0x30] sm:$0xff] %v459_v51  ;;  %v491_v59 = vmul.f32 %v459_v51, %v459_v51  ;;  %v477_v62 = vadd.f32 %v476_v57, %v459_v51 }
  0xc4   : > { %v498_v0 = vadd.f32 %v497_v61, %v491_v59 }
  0xc7   : > { %v460_v60 = vpop.f32.mrf.mxu3 }
  0xc8   : > { %v461_v63 = vadd.f32 %v946_v15, %v460_v60 }
  0xca   : > { %470 = vst [vmem:[%s955_s17 + $0x38] sm:$0xff] %v461_v63  ;;  %v478_v1 = vadd.f32 %v477_v62, %v461_v63  ;;  %v492_v2 = vmul.f32 %v461_v63, %v461_v63 }
  0xcc   : > { %v479_v3 = vrot.slane %v478_v1, 4  ;;  %v499_v4 = vadd.f32 %v498_v0, %v492_v2 }
  0xce   : > { %v480_v5 = vadd.f32 %v479_v3, %v478_v1  ;;  %v500_v6 = vrot.slane %v499_v4, 4 }
  0xd0   : > { %v481_v7 = vrot.slane %v480_v5, 2  ;;  %v501_v8 = vadd.f32 %v500_v6, %v499_v4 }
  0xd2   : > { %v482_v9 = vadd.f32 %v481_v7, %v480_v5  ;;  %v502_v10 = vrot.slane %v501_v8, 2 }
  0xd4   : > { %v483_v11 = vrot.slane %v482_v9, 1  ;;  %v503_v12 = vadd.f32 %v502_v10, %v501_v8 }
  0xd6   : > { %v504_v13 = vrot.slane %v503_v12, 1  ;;  %v484_v16 = vadd.f32 %v483_v11, %v482_v9 }
  0xd8   : > { %v505_v17 = vadd.f32 %v504_v13, %v503_v12 }
  0xda   : > { %v507_v15 = vsel %vm506_vm0, %v484_v16, %v505_v17 }
  0xdb   : > { %v508_v18 = vadd.f32 %v507_v15, %v471_v14 }
  0xdd   : > { %509 = vst [vmem:[#allocation2] sm:$0x3] %v508_v18 }
  0xe4   : > { %v513_v19 = vld [vmem:[#allocation2] sm:$0x3] }
  0xe5   : > { %548 = vmatmul.f32.vlgmr.msra.gmra.mxu1 %v513_v19 }
 0x162   : > { %v549_v20 = vpop.f32.mrf.mxu1 }
 0x163   : > { %v552_v21 = vmul.f32 0.0078125, %v549_v20 }
 0x165   : > { %v553_v22 = vmul.f32 %v552_v21, %v552_v21 }
 0x167   : > { %v555_v23 = vrot.slane %v553_v22, 7 }
 0x169   : > { %v557_v24 = vsub.f32 %v552_v21, %v555_v23 }
 0x16b   : > { %v558_v25 = vmax.f32 %v557_v24, 0.0 }
 0x16d   : > { %v559_v26 = vadd.f32 1e-05, %v558_v25 }
 0x16f   : > { %817 = vrsqrt.f32 %v559_v26  ;;  %vm566_vm2 = vweird.f32 %v559_v26 }
 0x175   : > { %v818_v27 = vpop.eup %817 }
 0x176   : > { %v561_v28 = vmul.f32 %v818_v27, %v559_v26  ;;  %vm567_vm1 = vweird.f32 %v818_v27 }
 0x177   : > { %vm568_vm3 = vmor %vm566_vm2, %vm567_vm1 }
 0x178   : > { %v562_v29 = vmul.f32 %v818_v27, %v561_v28 }
 0x17a   : > { %v563_v30 = vmul.f32 0.5, %v562_v29 }
 0x17c   : > { %v564_v31 = vsub.f32 1.5, %v563_v30 }
 0x17e   : > { %v565_v32 = vmul.f32 %v818_v27, %v564_v31 }
 0x180   : > { %v569_v33 = vsel %vm568_vm3, %v818_v27, %v565_v32 }
 0x181   : > { %571 = vst [vmem:[#allocation1] sm:$0xff] %v569_v33 }
 0x188   : > { %v573_v35 = vld [vmem:[#allocation1 + $0x1] ss:$9 sm:$0xff] }
 0x189   : > { %v575_v36 = vmul.f32 %v573_v35, %v530_v34 }
 0x18b   : > { %v576_v38 = vmul.f32 %v575_v36, %v552_v21 }
 0x18d   : > { %v577_v39 = vsub.f32 %v531_v37, %v576_v38 }
 0x18f   : > { %v579_v40 = vperm.slane %v577_v39, 0 }
 0x191   : > { %v581_v41 = vsel %vm506_vm0, %v575_v36, %v579_v40 }
 0x192   : > { %582 = vst [vmem:[%s328_s13] sm:$0x3] %v581_v41 }
 0x193 PF: > { %s18_s26 = sadd.s32 1, %s841_s26   ;;  %s1040_s24 = smov %s837_s25 }
 0x194   : > { %p15_p5 = scmp.ge.s32.totalorder %s18_s26, 4   ;;  %s1041_s25 = smov %s1043_s27 }
 0x196   :  { %17 = sbr.rel (!%p15_p5) target bundleno = 2 (0x2), region = 95 }

// kernel: down_block.7
= control target key start
LH: loop header
LB: loop body
LE: loop exit
PB: predicated region body
PF: predicated region fallthrough
CT: control target
= control target key end

     0   :  { %s446_s9 = smov 0   ;;  %s448_s10 = smov 0   ;;  %s514_s0 = inlined_call_operand.vmem [shape: f32[2,80,128], index: 0, kind: input, shape index: {}]   ;;  %s515_s1 = inlined_call_operand.vmem [shape: f32[2,2,128], index: 1, kind: input, shape index: {}]   ;;  %s516_s2 = inlined_call_operand.vmem [shape: f32[2,80,128], index: 2, kind: output, shape index: {}]  }
   0x1   :  { %s450_s11 = smov 0  }
   0x2 LB: > { %s24_s12 = sadd.s32 1, %s425_s10  ;;  %p376_p0 = scmp.ge.s32.totalorder %s429_s11, 1  ;;  %s429_s11 = sphi %s450_s11, %s12_s11   ;;  %s425_s10 = sphi %s448_s10, %s518_s10   ;;  %s421_s9 = sphi %s446_s9, %s517_s9  }
   0x3   : > { %p26_p1 = scmp.ge.s32.totalorder %s24_s12, 2  ;;  %p142_p2 = scmp.lt.s32.totalorder %s429_s11, 3 }
   0x5   : > { %s520_s12 = smov (%p26_p1, %s24_s12), 0  ;;  %p143_p3 = pnand %p376_p0, %p142_p2 }
   0x6   : > { %p177_p4 = scmp.lt.s32.totalorder (!%p143_p3), %s421_s9, 1 }
   0x7   : > { %146 = sbr.rel (%p143_p3) target bundleno = 36 (0x24), region = 28 }
   0xc   : > { %s522_s9 = smov (!%p177_p4, %s421_s9), 1 }
   0xd   : > { %s382_s13 = smul.u32 80, %s522_s9  ;;  %s378_s14 = sshll.u32 %s522_s9, 1 }
   0xe   : > { %s189_s17 = scalar_lea.vmem %s515_s1, %s378_s14 }
   0xf   : > { %s476_s20 = scalar_lea.vmem %s514_s0, %s382_s13  ;;  %v200_v0 = vld [vmem:[%s189_s17] sm:$0x3]  ;;  %s491_s23 = scalar_lea.vmem %s516_s2, %s382_s13 }
  0x10   : > { %v201_v1 = vld [vmem:[%s476_s20] sm:$0xff]  ;;  %v211_v2 = vperm.slane %v200_v0, 0  ;;  %v222_v3 = vperm.slane %v200_v0, 1  ;;  %v202_v4 = vld [vmem:[%s476_s20 + $0x8] sm:$0xff]  ;;  %v203_v5 = vld [vmem:[%s476_s20 + $0x10] sm:$0xff] }
  0x11   : > { %v204_v6 = vld [vmem:[%s476_s20 + $0x18] sm:$0xff]  ;;  %v205_v7 = vld [vmem:[%s476_s20 + $0x20] sm:$0xff]  ;;  %v206_v8 = vld [vmem:[%s476_s20 + $0x28] sm:$0xff] }
  0x12   : > { %v212_v9 = vmul.f32 %v211_v2, %v201_v1  ;;  %v213_v10 = vmul.f32 %v211_v2, %v202_v4  ;;  %v214_v11 = vmul.f32 %v211_v2, %v203_v5  ;;  %v215_v12 = vmul.f32 %v211_v2, %v204_v6  ;;  %v207_v13 = vld [vmem:[%s476_s20 + $0x30] sm:$0xff]  ;;  %v208_v14 = vld [vmem:[%s476_s20 + $0x38] sm:$0xff]  ;;  %v209_v34 = vld [vmem:[%s476_s20 + $0x40] sm:$0xff] }
  0x13   : > { %v216_v15 = vmul.f32 %v211_v2, %v205_v7  ;;  %v217_v16 = vmul.f32 %v211_v2, %v206_v8  ;;  %v218_v17 = vmul.f32 %v211_v2, %v207_v13  ;;  %v219_v18 = vmul.f32 %v211_v2, %v208_v14  ;;  %v210_v35 = vld [vmem:[%s476_s20 + $0x48] sm:$0xff] }
  0x14   : > { %v223_v19 = vadd.f32 %v222_v3, %v212_v9  ;;  %v224_v20 = vadd.f32 %v222_v3, %v213_v10  ;;  %v225_v21 = vadd.f32 %v222_v3, %v214_v11  ;;  %v226_v22 = vadd.f32 %v222_v3, %v215_v12 }
  0x15   : > { %v227_v23 = vadd.f32 %v222_v3, %v216_v15  ;;  %v228_v24 = vadd.f32 %v222_v3, %v217_v16  ;;  %v229_v25 = vadd.f32 %v222_v3, %v218_v17  ;;  %v230_v26 = vadd.f32 %v222_v3, %v219_v18 }
  0x16   : > { %vm233_vm0 = vcmp.gt.f32.partialorder %v223_v19, 0.0  ;;  %v243_v27 = vmul.f32 0.2, %v223_v19  ;;  %vm234_vm1 = vcmp.gt.f32.partialorder %v224_v20, 0.0  ;;  %v244_v28 = vmul.f32 0.2, %v224_v20 }
  0x17   : > { %vm235_vm2 = vcmp.gt.f32.partialorder %v225_v21, 0.0  ;;  %v245_v29 = vmul.f32 0.2, %v225_v21  ;;  %vm236_vm3 = vcmp.gt.f32.partialorder %v226_v22, 0.0  ;;  %v246_v30 = vmul.f32 0.2, %v226_v22 }
  0x18   : > { %v253_v31 = vsel %vm233_vm0, %v223_v19, %v243_v27  ;;  %v254_v32 = vsel %vm234_vm1, %v224_v20, %v244_v28  ;;  %vm237_vm4 = vcmp.gt.f32.partialorder %v227_v23, 0.0  ;;  %v247_v33 = vmul.f32 0.2, %v227_v23 }
  0x19   : > { %263 = vst [vmem:[%s491_s23] sm:$0xff] %v253_v31  ;;  %v255_v36 = vsel %vm235_vm2, %v225_v21, %v245_v29  ;;  %v256_v37 = vsel %vm236_vm3, %v226_v22, %v246_v30  ;;  %vm238_vm5 = vcmp.gt.f32.partialorder %v228_v24, 0.0  ;;  %v248_v38 = vmul.f32 0.2, %v228_v24 }
  0x1a   : > { %264 = vst [vmem:[%s491_s23 + $0x8] sm:$0xff] %v254_v32  ;;  %v257_v39 = vsel %vm237_vm4, %v227_v23, %v247_v33  ;;  %vm239_vm6 = vcmp.gt.f32.partialorder %v229_v25, 0.0  ;;  %v249_v40 = vmul.f32 0.2, %v229_v25  ;;  %vm240_vm7 = vcmp.gt.f32.partialorder %v230_v26, 0.0 }
  0x1b   : > { %265 = vst [vmem:[%s491_s23 + $0x10] sm:$0xff] %v255_v36  ;;  %v258_v41 = vsel %vm238_vm5, %v228_v24, %v248_v38  ;;  %v250_v42 = vmul.f32 0.2, %v230_v26  ;;  %v220_v43 = vmul.f32 %v211_v2, %v209_v34  ;;  %v221_v44 = vmul.f32 %v211_v2, %v210_v35 }
  0x1c   : > { %266 = vst [vmem:[%s491_s23 + $0x18] sm:$0xff] %v256_v37  ;;  %v259_v45 = vsel %vm239_vm6, %v229_v25, %v249_v40 }
  0x1d   : > { %267 = vst [vmem:[%s491_s23 + $0x20] sm:$0xff] %v257_v39  ;;  %v260_v46 = vsel %vm240_vm7, %v230_v26, %v250_v42  ;;  %v231_v47 = vadd.f32 %v222_v3, %v220_v43  ;;  %v232_v48 = vadd.f32 %v222_v3, %v221_v44 }
  0x1e   : > { %268 = vst [vmem:[%s491_s23 + $0x28] sm:$0xff] %v258_v41 }
  0x1f   : > { %269 = vst [vmem:[%s491_s23 + $0x30] sm:$0xff] %v259_v45  ;;  %vm241_vm8 = vcmp.gt.f32.partialorder %v231_v47, 0.0  ;;  %v251_v49 = vmul.f32 0.2, %v231_v47  ;;  %vm242_vm9 = vcmp.gt.f32.partialorder %v232_v48, 0.0 }
  0x20   : > { %270 = vst [vmem:[%s491_s23 + $0x38] sm:$0xff] %v260_v46  ;;  %v252_v50 = vmul.f32 0.2, %v232_v48 }
  0x21   : > { %v261_v51 = vsel %vm241_vm8, %v231_v47, %v251_v49 }
  0x22   : > { %271 = vst [vmem:[%s491_s23 + $0x40] sm:$0xff] %v261_v51  ;;  %v262_v52 = vsel %vm242_vm9, %v232_v48, %v252_v50 }
  0x23   : > { %272 = vst [vmem:[%s491_s23 + $0x48] sm:$0xff] %v262_v52 }
  0x24 PF: > { %s12_s11 = sadd.s32 1, %s429_s11   ;;  %s517_s9 = smov %s425_s10 }
  0x25   : > { %p9_p5 = scmp.ge.s32.totalorder %s12_s11, 4   ;;  %s518_s10 = smov %s520_s12 }
  0x27   :  { %11 = sbr.rel (!%p9_p5) target bundleno = 2 (0x2), region = 61 }

// kernel: down_block.6
= control target key start
LH: loop header
LB: loop body
LE: loop exit
PB: predicated region body
PF: predicated region fallthrough
CT: control target
= control target key end

     0   :  { %s2406_s27 = smov 0   ;;  %s2408_s28 = smov 0   ;;  %s2901_s0 = inlined_call_operand.vmem [shape: f32[2,1,104,128], index: 0, kind: input, shape index: {}]   ;;  %s2902_s1 = inlined_call_operand.vmem [shape: bf16[9,128,128], index: 1, kind: input, shape index: {}]   ;;  %s2903_s2 = inlined_call_operand.vmem [shape: f32[1,128], index: 2, kind: input, shape index: {}]   ;;  %s2904_s3 = inlined_call_operand.vmem [shape: f32[1,128], index: 3, kind: input, shape index: {}]   ;;  %s2905_s4 = inlined_call_operand.vmem [shape: f32[1,128], index: 4, kind: input, shape index: {}]   ;;  %s2906_s5 = inlined_call_operand.vmem [shape: f32[128,128], index: 5, kind: input, shape index: {}]   ;;  %s2907_s6 = inlined_call_operand.vmem [shape: f32[1,80,1], index: 6, kind: input, shape index: {}]   ;;  %s2908_s7 = inlined_call_operand.vmem [shape: f32[2,80,128], index: 7, kind: output, shape index: {0}]   ;;  %s2909_s8 = inlined_call_operand.vmem [shape: f32[2,2,128], index: 8, kind: output, shape index: {1}]  }
   0x1   :  { %s2410_s29 = smov 0  }
   0x2 LB: > { %s31_s30 = sadd.s32 1, %s2353_s28  ;;  %p1791_p0 = scmp.ge.s32.totalorder %s2357_s29, 1  ;;  %s2357_s29 = sphi %s2410_s29, %s19_s29   ;;  %s2353_s28 = sphi %s2408_s28, %s2911_s28   ;;  %s2349_s27 = sphi %s2406_s27, %s2910_s27  }
   0x3   : > { %p33_p1 = scmp.ge.s32.totalorder %s31_s30, 2  ;;  %p285_p2 = scmp.lt.s32.totalorder %s2357_s29, 3 }
   0x5   : > { %s2913_s30 = smov (%p33_p1, %s31_s30), 0  ;;  %p286_p3 = pnand %p1791_p0, %p285_p2 }
   0x6   : > { %p331_p4 = scmp.lt.s32.totalorder (!%p286_p3), %s2349_s27, 1 }
   0x7   : > { %289 = sbr.rel (%p286_p3) target bundleno = 571 (0x23b), region = 48 }
   0xc   : > { %v2228_v0 = vld [vmem:[%s2902_s1 + $0x78] sm:$0xff]  ;;  %v2227_v2 = vld [vmem:[%s2902_s1 + $0x70] sm:$0xff]  ;;  %v2226_v4 = vld [vmem:[%s2902_s1 + $0x68] sm:$0xff]  ;;  %s2915_s27 = smov (!%p331_p4, %s2349_s27), 1  ;;  %vm1589_vm0 = vcmask 1040384  }
   0xd   : > { %v2220_v1 = vld [vmem:[%s2902_s1 + $0x38] sm:$0xff]  ;;  %2285 = vmatpush.bf16.msra.mxu2 %v2228_v0  ;;  %2286 = vmatpush.bf16.msra.mxu3 %v2228_v0  ;;  %v2219_v3 = vld [vmem:[%s2902_s1 + $0x30] sm:$0xff]  ;;  %v2218_v5 = vld [vmem:[%s2902_s1 + $0x28] sm:$0xff]  ;;  %s2301_s15 = smul.u32 104, %s2915_s27  ;;  %s1794_s10 = sshll.u32 %s2915_s27, 1 }
   0xe   : > { %552 = vmatpush.bf16.msra.mxu1 %v2220_v1  ;;  %470 = vmatpush.bf16.msra.mxu0 %v2228_v0  ;;  %v2225_v6 = vld [vmem:[%s2902_s1 + $0x60] sm:$0xff]  ;;  %v2224_v8 = vld [vmem:[%s2902_s1 + $0x58] sm:$0xff]  ;;  %v2223_v10 = vld [vmem:[%s2902_s1 + $0x50] sm:$0xff]  ;;  %s2302_s24 = smul.u32 80, %s2915_s27  ;;  %s353_s14 = scalar_lea.vmem %s2909_s8, %s1794_s10 }
   0xf   : > { %v2217_v7 = vld [vmem:[%s2902_s1 + $0x20] sm:$0xff]  ;;  %v2216_v9 = vld [vmem:[%s2902_s1 + $0x18] sm:$0xff]  ;;  %v2215_v11 = vld [vmem:[%s2902_s1 + $0x10] sm:$0xff]  ;;  %s2476_s22 = scalar_lea.vmem %s2901_s0, %s2301_s15 }
  0x10   : > { %v2222_v12 = vld [vmem:[%s2902_s1 + $0x48] sm:$0xff]  ;;  %v2221_v14 = vld [vmem:[%s2902_s1 + $0x40] sm:$0xff]  ;;  %v2244_v16 = vld [vmem:[%s2902_s1 + $0xf8] sm:$0xff]  ;;  %s2807_s13 = scalar_lea.vmem %s2908_s7, %s2302_s24 }
  0x11   : > { %2287 = vmatpush.bf16.msra.mxu2 %v2227_v2  ;;  %2288 = vmatpush.bf16.msra.mxu3 %v2227_v2  ;;  %v2214_v13 = vld [vmem:[%s2902_s1 + $0x8] sm:$0xff]  ;;  %v2213_v15 = vld [vmem:[%s2902_s1] sm:$0xff]  ;;  %v2236_v23 = vld [vmem:[%s2902_s1 + $0xb8] sm:$0xff] }
  0x12   : > { %553 = vmatpush.bf16.msra.mxu1 %v2219_v3  ;;  %471 = vmatpush.bf16.msra.mxu0 %v2227_v2  ;;  %v394_v17 = vld [vmem:[%s2476_s22 + $0x21] sm:$0xff]  ;;  %v395_v18 = vld [vmem:[%s2476_s22 + $0x29] sm:$0xff]  ;;  %v2252_v27 = vld [vmem:[%s2902_s1 + $0x138] sm:$0xff] }
  0x13   : > { %v359_v19 = vld [vmem:[%s2476_s22] sm:$0xff]  ;;  %v360_v20 = vld [vmem:[%s2476_s22 + $0x8] sm:$0xff]  ;;  %v402_v26 = vpack.c.bf16 %v395_v18, %v394_v17  ;;  %v2243_v31 = vld [vmem:[%s2902_s1 + $0xf0] sm:$0xff] }
  0x14   : > { %v398_v21 = vld [vmem:[%s2476_s22 + $0x41] sm:$0xff]  ;;  %v399_v22 = vld [vmem:[%s2476_s22 + $0x49] sm:$0xff]  ;;  %v369_v28 = vpack.c.bf16 %v360_v20, %v359_v19  ;;  %v2260_v35 = vld [vmem:[%s2902_s1 + $0x178] sm:$0xff] }
  0x15   : > { %2289 = vmatpush.bf16.msra.mxu2 %v2226_v4  ;;  %2290 = vmatpush.bf16.msra.mxu3 %v2226_v4  ;;  %v390_v24 = vld [vmem:[%s2476_s22 + $0x1] sm:$0xff]  ;;  %v391_v25 = vld [vmem:[%s2476_s22 + $0x9] sm:$0xff]  ;;  %v404_v29 = vpack.c.bf16 %v399_v22, %v398_v21  ;;  %v396_v41 = vld [vmem:[%s2476_s22 + $0x31] sm:$0xff] }
  0x16   : > { %554 = vmatpush.bf16.msra.mxu1 %v2218_v5  ;;  %472 = vmatpush.bf16.msra.mxu0 %v2226_v4  ;;  %v400_v30 = vpack.c.bf16 %v391_v25, %v390_v24  ;;  %v2235_v32 = vld [vmem:[%s2902_s1 + $0xb0] sm:$0xff]  ;;  %v2242_v34 = vld [vmem:[%s2902_s1 + $0xe8] sm:$0xff]  ;;  %v2241_v38 = vld [vmem:[%s2902_s1 + $0xe0] sm:$0xff] }
  0x17   : > { %v2251_v33 = vld [vmem:[%s2902_s1 + $0x130] sm:$0xff]  ;;  %v2234_v36 = vld [vmem:[%s2902_s1 + $0xa8] sm:$0xff]  ;;  %v2233_v39 = vld [vmem:[%s2902_s1 + $0xa0] sm:$0xff] }
  0x18   : > { %v2250_v37 = vld [vmem:[%s2902_s1 + $0x128] sm:$0xff]  ;;  %v2249_v40 = vld [vmem:[%s2902_s1 + $0x120] sm:$0xff]  ;;  %v2240_v43 = vld [vmem:[%s2902_s1 + $0xd8] sm:$0xff] }
  0x19   : > { %2291 = vmatpush.bf16.msra.mxu2 %v2225_v6  ;;  %2292 = vmatpush.bf16.msra.mxu3 %v2225_v6  ;;  %v397_v42 = vld [vmem:[%s2476_s22 + $0x39] sm:$0xff]  ;;  %v361_v44 = vld [vmem:[%s2476_s22 + $0x10] sm:$0xff]  ;;  %v2238_v57 = vld [vmem:[%s2902_s1 + $0xc8] sm:$0xff] }
  0x1a   : > { %555 = vmatpush.bf16.msra.mxu1 %v2217_v7  ;;  %473 = vmatpush.bf16.msra.mxu0 %v2225_v6  ;;  %v362_v45 = vld [vmem:[%s2476_s22 + $0x18] sm:$0xff]  ;;  %v403_v49 = vpack.c.bf16 %v397_v42, %v396_v41  ;;  %v2259_v52 = vld [vmem:[%s2902_s1 + $0x170] sm:$0xff]  ;;  %v2230_v58 = vld [vmem:[%s2902_s1 + $0x88] sm:$0xff] }
  0x1b   : > { %v2232_v46 = vld [vmem:[%s2902_s1 + $0x98] sm:$0xff]  ;;  %v370_v51 = vpack.c.bf16 %v362_v45, %v361_v44  ;;  %v2239_v54 = vld [vmem:[%s2902_s1 + $0xd0] sm:$0xff]  ;;  %v2258_v59 = vld [vmem:[%s2902_s1 + $0x168] sm:$0xff] }
  0x1c   : > { %v392_v47 = vld [vmem:[%s2476_s22 + $0x11] sm:$0xff]  ;;  %v393_v48 = vld [vmem:[%s2476_s22 + $0x19] sm:$0xff]  ;;  %v2246_v60 = vld [vmem:[%s2902_s1 + $0x108] sm:$0xff] }
  0x1d   : > { %2293 = vmatpush.bf16.msra.mxu2 %v2224_v8  ;;  %2294 = vmatpush.bf16.msra.mxu3 %v2224_v8  ;;  %v2248_v50 = vld [vmem:[%s2902_s1 + $0x118] sm:$0xff]  ;;  %v401_v53 = vpack.c.bf16 %v393_v48, %v392_v47  ;;  %v2231_v55 = vld [vmem:[%s2902_s1 + $0x90] sm:$0xff]  ;;  %v2237_v61 = vld [vmem:[%s2902_s1 + $0xc0] sm:$0xff] }
  0x1e   : > { %556 = vmatpush.bf16.msra.mxu1 %v2216_v9  ;;  %474 = vmatpush.bf16.msra.mxu0 %v2224_v8  ;;  %v2247_v56 = vld [vmem:[%s2902_s1 + $0x110] sm:$0xff]  ;;  %v2229_v0 = vld [vmem:[%s2902_s1 + $0x80] sm:$0xff]  ;;  %v2276_v1 = vld [vmem:[%s2902_s1 + $0x1f8] sm:$0xff] }
  0x1f   : > { %v710_v62 = vld [vmem:[%s2476_s22 + $0xa] sm:$0xff]  ;;  %v2575_v63 = vld [vmem:[%s2476_s22 + $0x12] sm:$0xff]  ;;  %v2245_v2 = vld [vmem:[%s2902_s1 + $0x100] sm:$0xff] }
  0x20   : > { %v2268_v3 = vld [vmem:[%s2902_s1 + $0x1b8] sm:$0xff]  ;;  %v720_v4 = vpack.c.bf16 %v2575_v63, %v710_v62  ;;  %v586_v5 = vld [vmem:[%s2476_s22 + $0x2] sm:$0xff]  ;;  %v834_v9 = vld [vmem:[%s2476_s22 + $0xb] sm:$0xff] }
  0x21   : > { %2295 = vmatpush.bf16.msra.mxu2 %v2223_v10  ;;  %2296 = vmatpush.bf16.msra.mxu3 %v2223_v10  ;;  %v2284_v6 = vld [vmem:[%s2902_s1 + $0x238] sm:$0xff]  ;;  %v363_v7 = vld [vmem:[%s2476_s22 + $0x20] sm:$0xff]  ;;  %v364_v8 = vld [vmem:[%s2476_s22 + $0x28] sm:$0xff] }
  0x22   : > { %557 = vmatpush.bf16.msra.mxu1 %v2215_v11  ;;  %475 = vmatpush.bf16.msra.mxu0 %v2223_v10  ;;  %v835_v10 = vld [vmem:[%s2476_s22 + $0x13] sm:$0xff]  ;;  %v2274_v18 = vld [vmem:[%s2902_s1 + $0x1e8] sm:$0xff]  ;;  %v2265_v24 = vld [vmem:[%s2902_s1 + $0x1a0] sm:$0xff] }
  0x23   : > { %v2275_v11 = vld [vmem:[%s2902_s1 + $0x1f0] sm:$0xff]  ;;  %v2256_v19 = vld [vmem:[%s2902_s1 + $0x158] sm:$0xff]  ;;  %v2266_v20 = vld [vmem:[%s2902_s1 + $0x1a8] sm:$0xff] }
  0x24   : > { %v2283_v17 = vld [vmem:[%s2902_s1 + $0x230] sm:$0xff]  ;;  %v2282_v22 = vld [vmem:[%s2902_s1 + $0x228] sm:$0xff]  ;;  %v712_v25 = vld [vmem:[%s2476_s22 + $0x1a] sm:$0xff] }
  0x25   : > { %2297 = vmatpush.bf16.msra.mxu2 %v2222_v12  ;;  %2298 = vmatpush.bf16.msra.mxu3 %v2222_v12  ;;  %v2255_v21 = vld [vmem:[%s2902_s1 + $0x150] sm:$0xff]  ;;  %v2280_v41 = vld [vmem:[%s2902_s1 + $0x218] sm:$0xff]  ;;  %v367_v48 = vld [vmem:[%s2476_s22 + $0x40] sm:$0xff] }
  0x26   : > { %558 = vmatpush.bf16.msra.mxu1 %v2214_v13  ;;  %476 = vmatpush.bf16.msra.mxu0 %v2222_v12  ;;  %v596_v12 = vpack.c.bf16 %v710_v62, %v586_v5  ;;  %v2257_v13 = vld [vmem:[%s2902_s1 + $0x160] sm:$0xff]  ;;  %v2271_v42 = vld [vmem:[%s2902_s1 + $0x1d0] sm:$0xff] }
  0x27   : > { %v2279_v44 = vld [vmem:[%s2902_s1 + $0x210] sm:$0xff] }
  0x28   : > { %v714_v45 = vld [vmem:[%s2476_s22 + $0x2a] sm:$0xff] }
  0x29   : > { %2299 = vmatpush.bf16.msra.mxu2 %v2221_v14  ;;  %2300 = vmatpush.bf16.msra.mxu3 %v2221_v14  ;;  %v958_v62 = vld [vmem:[%s2476_s22 + $0xc] sm:$0xff] }
  0x2a   : > { %559 = vmatpush.bf16.msra.mxu1 %v2213_v15  ;;  %477 = vmatpush.bf16.msra.mxu0 %v2221_v14  ;;  %v371_v14 = vpack.c.bf16 %v364_v8, %v363_v7  ;;  %v2267_v15 = vld [vmem:[%s2902_s1 + $0x1b0] sm:$0xff] }
  0x2b   : > { %v719_v7 = vld [vmem:[%s2476_s22 + $0x52] sm:$0xff] }
  0x2c   : > { %488 = vmatmul.bf16.vlgmr.msra.gmra.mxu2 %v402_v26  ;;  %498 = vmatmul.bf16.vlgmr.msra.gmra.mxu3 %v404_v29  ;;  %v713_v26 = vld [vmem:[%s2476_s22 + $0x22] sm:$0xff]  ;;  %v2272_v29 = vld [vmem:[%s2902_s1 + $0x1d8] sm:$0xff] }
  0x2d   : > { %790 = vmatpush.bf16.msrb.mxu3 %v2244_v16  ;;  %666 = vmatpush.bf16.msrb.mxu2 %v2236_v23  ;;  %v844_v16 = vpack.c.bf16 %v835_v10, %v834_v9  ;;  %v2273_v23 = vld [vmem:[%s2902_s1 + $0x1e0] sm:$0xff] }
  0x2e   : > { %914 = vmatpush.bf16.msrb.mxu0 %v2252_v27  ;;  %560 = vmatmul.bf16.vlgmr.msra.gmra.mxu1 %v369_v28  ;;  %v2254_v27 = vld [vmem:[%s2902_s1 + $0x148] sm:$0xff]  ;;  %v2281_v28 = vld [vmem:[%s2902_s1 + $0x220] sm:$0xff] }
  0x2f   : > { %478 = vmatmul.bf16.vlgmr.msra.gmra.mxu0 %v400_v30  ;;  %1038 = vmatpush.bf16.msrb.mxu1 %v2260_v35  ;;  %v721_v30 = vpack.c.bf16 %v713_v26, %v712_v25  ;;  %v837_v35 = vld [vmem:[%s2476_s22 + $0x23] sm:$0xff] }
  0x30   : > { %v960_v9 = vld [vmem:[%s2476_s22 + $0x1c] sm:$0xff]  ;;  %v961_v10 = vld [vmem:[%s2476_s22 + $0x24] sm:$0xff] }
  0x31   : > { %791 = vmatpush.bf16.msrb.mxu3 %v2243_v31  ;;  %667 = vmatpush.bf16.msrb.mxu2 %v2235_v32  ;;  %v2264_v31 = vld [vmem:[%s2902_s1 + $0x198] sm:$0xff]  ;;  %v365_v32 = vld [vmem:[%s2476_s22 + $0x30] sm:$0xff] }
  0x32   : > { %915 = vmatpush.bf16.msrb.mxu0 %v2251_v33  ;;  %v366_v33 = vld [vmem:[%s2476_s22 + $0x38] sm:$0xff] }
  0x33   : > { %1039 = vmatpush.bf16.msrb.mxu1 %v2259_v52  ;;  %v598_v52 = vpack.c.bf16 %v714_v45, %v713_v26 }
  0x35   : > { %792 = vmatpush.bf16.msrb.mxu3 %v2242_v34  ;;  %668 = vmatpush.bf16.msrb.mxu2 %v2234_v36  ;;  %v836_v34 = vld [vmem:[%s2476_s22 + $0x1b] sm:$0xff]  ;;  %v597_v36 = vpack.c.bf16 %v712_v25, %v2575_v63 }
  0x36   : > { %916 = vmatpush.bf16.msrb.mxu0 %v2250_v37  ;;  %v2253_v37 = vld [vmem:[%s2902_s1 + $0x140] sm:$0xff]  ;;  %v959_v63 = vld [vmem:[%s2476_s22 + $0x14] sm:$0xff] }
  0x37   : > { %1040 = vmatpush.bf16.msrb.mxu1 %v2258_v59  ;;  %v716_v59 = vld [vmem:[%s2476_s22 + $0x3a] sm:$0xff]  ;;  %v1092_v25 = vpack.c.bf16 %v960_v9, %v959_v63 }
  0x39   : > { %793 = vmatpush.bf16.msrb.mxu3 %v2241_v38  ;;  %669 = vmatpush.bf16.msrb.mxu2 %v2233_v39  ;;  %v372_v38 = vpack.c.bf16 %v366_v33, %v365_v32  ;;  %v845_v39 = vpack.c.bf16 %v837_v35, %v836_v34  ;;  %v964_v33 = vld [vmem:[%s2476_s22 + $0x3c] sm:$0xff]  ;;  %v965_v34 = vld [vmem:[%s2476_s22 + $0x44] sm:$0xff] }
  0x3a   : > { %917 = vmatpush.bf16.msrb.mxu0 %v2249_v40  ;;  %v2263_v40 = vld [vmem:[%s2902_s1 + $0x190] sm:$0xff]  ;;  %v1332_v35 = vld [vmem:[%s2476_s22 + $0x26] sm:$0xff] }
  0x3b   : > { %1041 = vmatpush.bf16.msrb.mxu1 %v2257_v13 }
  0x3c   : > { %493 = vmatmul.bf16.gmra.mxu2 %v403_v49  ;;  %v368_v49 = vld [vmem:[%s2476_s22 + $0x48] sm:$0xff] }
  0x3d   : > { %794 = vmatpush.bf16.msrb.mxu3 %v2240_v43  ;;  %670 = vmatpush.bf16.msrb.mxu2 %v2232_v46  ;;  %v2262_v43 = vld [vmem:[%s2902_s1 + $0x188] sm:$0xff]  ;;  %v715_v46 = vld [vmem:[%s2476_s22 + $0x32] sm:$0xff] }
  0x3e   : > { %918 = vmatpush.bf16.msrb.mxu0 %v2248_v50  ;;  %565 = vmatmul.bf16.gmra.mxu1 %v370_v51  ;;  %v722_v47 = vpack.c.bf16 %v715_v46, %v714_v45  ;;  %v838_v50 = vld [vmem:[%s2476_s22 + $0x2b] sm:$0xff]  ;;  %v839_v51 = vld [vmem:[%s2476_s22 + $0x33] sm:$0xff] }
  0x3f   : > { %483 = vmatmul.bf16.gmra.mxu0 %v401_v53  ;;  %1042 = vmatpush.bf16.msrb.mxu1 %v2256_v19  ;;  %v373_v53 = vpack.c.bf16 %v368_v49, %v367_v48 }
  0x41   : > { %795 = vmatpush.bf16.msrb.mxu3 %v2239_v54  ;;  %671 = vmatpush.bf16.msrb.mxu2 %v2231_v55  ;;  %v2270_v54 = vld [vmem:[%s2902_s1 + $0x1c8] sm:$0xff]  ;;  %v846_v55 = vpack.c.bf16 %v839_v51, %v838_v50 }
  0x42   : > { %919 = vmatpush.bf16.msrb.mxu0 %v2247_v56  ;;  %v2261_v56 = vld [vmem:[%s2902_s1 + $0x180] sm:$0xff]  ;;  %v966_v51 = vld [vmem:[%s2476_s22 + $0x4c] sm:$0xff] }
  0x43   : > { %1043 = vmatpush.bf16.msrb.mxu1 %v2255_v21  ;;  %v962_v21 = vld [vmem:[%s2476_s22 + $0x2c] sm:$0xff] }
  0x45   : > { %796 = vmatpush.bf16.msrb.mxu3 %v2238_v57  ;;  %672 = vmatpush.bf16.msrb.mxu2 %v2230_v58  ;;  %v2278_v57 = vld [vmem:[%s2902_s1 + $0x208] sm:$0xff]  ;;  %v2269_v58 = vld [vmem:[%s2902_s1 + $0x1c0] sm:$0xff] }
  0x46   : > { %920 = vmatpush.bf16.msrb.mxu0 %v2246_v60  ;;  %v717_v60 = vld [vmem:[%s2476_s22 + $0x42] sm:$0xff] }
  0x47   : > { %1044 = vmatpush.bf16.msrb.mxu1 %v2254_v27 }
  0x49   : > { %797 = vmatpush.bf16.msrb.mxu3 %v2237_v61  ;;  %673 = vmatpush.bf16.msrb.mxu2 %v2229_v0  ;;  %v723_v61 = vpack.c.bf16 %v717_v60, %v716_v59  ;;  %v840_v0 = vld [vmem:[%s2476_s22 + $0x3b] sm:$0xff] }
  0x4a   : > { %921 = vmatpush.bf16.msrb.mxu0 %v2245_v2  ;;  %v599_v2 = vpack.c.bf16 %v716_v59, %v715_v46  ;;  %v1210_v46 = vld [vmem:[%s2476_s22 + $0x35] sm:$0xff] }
  0x4b   : > { %1045 = vmatpush.bf16.msrb.mxu1 %v2253_v37  ;;  %v1093_v37 = vpack.c.bf16 %v962_v21, %v961_v10 }
  0x4c   : > { %798 = vmatmul.bf16.vlgmr.msrb.gmra.mxu3 %v720_v4  ;;  %674 = vmatmul.bf16.vlgmr.msrb.gmra.mxu2 %v596_v12  ;;  %v2277_v4 = vld [vmem:[%s2902_s1 + $0x200] sm:$0xff]  ;;  %v843_v12 = vld [vmem:[%s2476_s22 + $0x53] sm:$0xff] }
  0x4d   : > { %1286 = vmatpush.bf16.msra.mxu3 %v2276_v1  ;;  %1162 = vmatpush.bf16.msra.mxu2 %v2268_v3  ;;  %v841_v1 = vld [vmem:[%s2476_s22 + $0x43] sm:$0xff]  ;;  %v968_v3 = vpack.c.bf16 %v959_v63, %v958_v62  ;;  %v1484_v63 = vld [vmem:[%s2907_s6 + $0x30] sm:$0xff] }
  0x4e   : > { %1410 = vmatpush.bf16.msra.mxu0 %v2284_v6  ;;  %570 = vmatmul.bf16.gmra.mxu1 %v371_v14  ;;  %v847_v5 = vpack.c.bf16 %v841_v1, %v840_v0  ;;  %v718_v6 = vld [vmem:[%s2476_s22 + $0x4a] sm:$0xff]  ;;  %v969_v14 = vpack.c.bf16 %v961_v10, %v960_v9 }
  0x4f   : > { %922 = vmatmul.bf16.vlgmr.msrb.gmra.mxu0 %v844_v16  ;;  %v724_v8 = vpack.c.bf16 %v719_v7, %v718_v6  ;;  %v600_v13 = vpack.c.bf16 %v718_v6, %v717_v60  ;;  %v1206_v16 = vld [vmem:[%s2476_s22 + $0x15] sm:$0xff]  ;;  %v1487_v7 = vld [vmem:[%s2907_s6 + $0x48] sm:$0xff] }
  0x50   : > { %v1336_v10 = vld [vmem:[%s2476_s22 + $0x46] sm:$0xff] }
  0x51   : > { %1287 = vmatpush.bf16.msra.mxu3 %v2275_v11  ;;  %1163 = vmatpush.bf16.msra.mxu2 %v2267_v15  ;;  %v842_v11 = vld [vmem:[%s2476_s22 + $0x4b] sm:$0xff] }
  0x52   : > { %1411 = vmatpush.bf16.msra.mxu0 %v2283_v17  ;;  %v848_v15 = vpack.c.bf16 %v843_v12, %v842_v11  ;;  %v1207_v17 = vld [vmem:[%s2476_s22 + $0x1d] sm:$0xff]  ;;  %v1337_v11 = vld [vmem:[%s2476_s22 + $0x4e] sm:$0xff]  ;;  %v1095_v12 = vpack.c.bf16 %v966_v51, %v965_v34 }
  0x53   : > { %v1216_v19 = vpack.c.bf16 %v1207_v17, %v1206_v16 }
  0x55   : > { %1288 = vmatpush.bf16.msra.mxu3 %v2274_v18  ;;  %1164 = vmatpush.bf16.msra.mxu2 %v2266_v20  ;;  %v1478_v18 = vld [vmem:[%s2907_s6] sm:$0xff]  ;;  %v2359_v20 = vmov 0  }
  0x56   : > { %1412 = vmatpush.bf16.msra.mxu0 %v2282_v22  ;;  %2329 = vset.pattern.permute.xlu0 %v2359_v20  ;;  %v963_v22 = vld [vmem:[%s2476_s22 + $0x34] sm:$0xff] }
  0x57   : > { %2330 = vset.pattern.permute.xlu1 %v2359_v20  ;;  %1490 = vperm.xlu0 %2329, %v1478_v18   ;;  %v970_v26 = vpack.c.bf16 %v963_v22, %v962_v21 }
  0x58   : > { %2331 = vset.pattern.permute.xlu2 %v2359_v20 }
  0x59   : > { %1289 = vmatpush.bf16.msra.mxu3 %v2273_v23  ;;  %1165 = vmatpush.bf16.msra.mxu2 %v2265_v24  ;;  %v1330_v23 = vld [vmem:[%s2476_s22 + $0x16] sm:$0xff]  ;;  %v1331_v24 = vld [vmem:[%s2476_s22 + $0x1e] sm:$0xff] }
  0x5a   : > { %1413 = vmatpush.bf16.msra.mxu0 %v2281_v28  ;;  %v1340_v27 = vpack.c.bf16 %v1331_v24, %v1330_v23  ;;  %v1479_v28 = vld [vmem:[%s2907_s6 + $0x8] sm:$0xff]  ;;  %v1214_v24 = vld [vmem:[%s2476_s22 + $0x55] sm:$0xff] }
  0x5c   : > { %803 = vmatmul.bf16.gmra.mxu3 %v721_v30  ;;  %679 = vmatmul.bf16.gmra.mxu2 %v597_v36  ;;  %v1209_v30 = vld [vmem:[%s2476_s22 + $0x2d] sm:$0xff] }
  0x5d   : > { %1290 = vmatpush.bf16.msra.mxu3 %v2272_v29  ;;  %1166 = vmatpush.bf16.msra.mxu2 %v2264_v31  ;;  %v1208_v29 = vld [vmem:[%s2476_s22 + $0x25] sm:$0xff]  ;;  %v1480_v31 = vld [vmem:[%s2907_s6 + $0x10] sm:$0xff] }
  0x5e   : > { %575 = vmatmul.bf16.gmra.mxu1 %v372_v38  ;;  %1414 = vmatpush.bf16.msra.mxu0 %v2280_v41  ;;  %v1217_v32 = vpack.c.bf16 %v1209_v30, %v1208_v29  ;;  %v1333_v36 = vld [vmem:[%s2476_s22 + $0x2e] sm:$0xff]  ;;  %v971_v38 = vpack.c.bf16 %v965_v34, %v964_v33  ;;  %v1338_v34 = vld [vmem:[%s2476_s22 + $0x56] sm:$0xff] }
  0x5f   : > { %927 = vmatmul.bf16.gmra.mxu0 %v845_v39  ;;  %1495 = vperm.xlu0 %2329, %v1479_v28   ;;  %v1483_v29 = vld [vmem:[%s2907_s6 + $0x28] sm:$0xff] }
  0x60   : > { %1500 = vperm.xlu1 %2330, %v1480_v31  }
  0x61   : > { %1167 = vmatpush.bf16.msra.mxu2 %v2263_v40  ;;  %1291 = vmatpush.bf16.msra.mxu3 %v2271_v42  ;;  %v1341_v40 = vpack.c.bf16 %v1333_v36, %v1332_v35  ;;  %v1339_v35 = vld [vmem:[%s2476_s22 + $0x5e] sm:$0xff] }
  0x62   : > { %1415 = vmatpush.bf16.msra.mxu0 %v2279_v44 }
  0x65   : > { %1168 = vmatpush.bf16.msra.mxu2 %v2262_v43  ;;  %1292 = vmatpush.bf16.msra.mxu3 %v2270_v54  ;;  %v1481_v43 = vld [vmem:[%s2907_s6 + $0x18] sm:$0xff] }
  0x66   : > { %1416 = vmatpush.bf16.msra.mxu0 %v2278_v57  ;;  %v1334_v54 = vld [vmem:[%s2476_s22 + $0x36] sm:$0xff] }
  0x67   : > { %1520 = vperm.xlu0 %2329, %v1484_v63  }
  0x68   : > { %1505 = vperm.xlu1 %2330, %v1481_v43  }
  0x69   : > { %1169 = vmatpush.bf16.msra.mxu2 %v2261_v56  ;;  %1293 = vmatpush.bf16.msra.mxu3 %v2269_v58  ;;  %v1094_v56 = vpack.c.bf16 %v964_v33, %v963_v22 }
  0x6a   : > { %1417 = vmatpush.bf16.msra.mxu0 %v2277_v4 }
  0x6c   : > { %808 = vmatmul.bf16.gmra.mxu3 %v722_v47  ;;  %684 = vmatmul.bf16.gmra.mxu2 %v598_v52  ;;  %v1211_v47 = vld [vmem:[%s2476_s22 + $0x3d] sm:$0xff]  ;;  %v2731_v52 = vld [vmem:[%s2476_s22 + $0x54] sm:$0xff] }
  0x6d   : > { %v1218_v50 = vpack.c.bf16 %v1211_v47, %v1210_v46  ;;  %v972_v57 = vpack.c.bf16 %v2731_v52, %v966_v51 }
  0x6e   : > { %580 = vmatmul.bf16.gmra.mxu1 %v373_v53 }
  0x6f   : > { %932 = vmatmul.bf16.gmra.mxu0 %v846_v55  ;;  %v1335_v55 = vld [vmem:[%s2476_s22 + $0x3e] sm:$0xff]  ;;  %1535 = vperm.xlu0 %2329, %v1487_v7  }
  0x70   : > { %v1342_v60 = vpack.c.bf16 %v1335_v55, %v1334_v54 }
  0x7c   : > { %813 = vmatmul.bf16.gmra.mxu3 %v723_v61  ;;  %689 = vmatmul.bf16.gmra.mxu2 %v599_v2  ;;  %v1212_v2 = vld [vmem:[%s2476_s22 + $0x45] sm:$0xff] }
  0x7e   : > { %1046 = vmatmul.bf16.vlgmr.msrb.gmra.mxu1 %v968_v3  ;;  %v1213_v3 = vld [vmem:[%s2476_s22 + $0x4d] sm:$0xff] }
  0x7f   : > { %937 = vmatmul.bf16.gmra.mxu0 %v847_v5 }
  0x8c   : > { %818 = vmatmul.bf16.gmra.mxu3 %v724_v8  ;;  %694 = vmatmul.bf16.gmra.mxu2 %v600_v13  ;;  %v1219_v8 = vpack.c.bf16 %v1213_v3, %v1212_v2  ;;  %v1485_v13 = vld [vmem:[%s2907_s6 + $0x38] sm:$0xff] }
  0x8d   : > { %1525 = vperm.xlu1 %2330, %v1485_v13  }
  0x8e   : > { %1051 = vmatmul.bf16.gmra.mxu1 %v969_v14 }
  0x8f   : > { %942 = vmatmul.bf16.gmra.mxu0 %v848_v15  ;;  %v1343_v15 = vpack.c.bf16 %v1337_v11, %v1336_v10 }
  0x9c   : > { %1294 = vmatmul.bf16.vlgmr.msra.gmra.mxu3 %v1216_v19  ;;  %1170 = vmatmul.bf16.vlgmr.msra.gmra.mxu2 %v1092_v25  ;;  %v1482_v19 = vld [vmem:[%s2907_s6 + $0x20] sm:$0xff] }
  0x9d   : > { %1510 = vperm.xlu2 %2331, %v1482_v19   ;;  %v1215_v25 = vld [vmem:[%s2476_s22 + $0x5d] sm:$0xff] }
  0x9e   : > { %1056 = vmatmul.bf16.gmra.mxu1 %v970_v26  ;;  %v1220_v31 = vpack.c.bf16 %v1215_v25, %v1214_v24 }
  0x9f   : > { %1418 = vmatmul.bf16.vlgmr.msra.gmra.mxu0 %v1340_v27 }
  0xa5   : > { %1515 = vperm.xlu2 %2331, %v1483_v29  }
  0xab   : > { %v561_v39 = vpop.f32.mrf.mxu1 }
  0xac   : > { %1299 = vmatmul.bf16.gmra.mxu3 %v1217_v32  ;;  %v479_v41 = vpop.f32.mrf.mxu0  ;;  %1175 = vmatmul.bf16.gmra.mxu2 %v1093_v37  ;;  %v1091_v32 = vld [vmem:[%s2476_s22 + $0x5c] sm:$0xff] }
  0xad   : > { %v562_v42 = vadd.f32 %v561_v39, %v479_v41  ;;  %v1096_v37 = vpack.c.bf16 %v1091_v32, %v2731_v52 }
  0xae   : > { %1061 = vmatmul.bf16.gmra.mxu1 %v971_v38 }
  0xaf   : > { %1423 = vmatmul.bf16.gmra.mxu0 %v1341_v40  ;;  %v489_v44 = vpop.f32.mrf.mxu2  ;;  %v2736_v58 = vpop.f32.mrf.mxu3  ;;  %v1344_v40 = vpack.c.bf16 %v1339_v35, %v1338_v34 }
  0xb3   : > { %v563_v45 = vpop.f32.mrf.mxu1 }
  0xb4   : > { %v481_v48 = vpop.f32.mrf.mxu0 }
  0xb5   : > { %v2727_v49 = vadd.f32 %v563_v45, %v481_v48 }
  0xb7   : > { %v491_v53 = vpop.f32.mrf.mxu2  ;;  %v2743_v5 = vpop.f32.mrf.mxu3 }
  0xbb   : > { %v566_v59 = vpop.f32.mrf.mxu1 }
  0xbc   : > { %1304 = vmatmul.bf16.gmra.mxu3 %v1218_v50  ;;  %v484_v61 = vpop.f32.mrf.mxu0  ;;  %1180 = vmatmul.bf16.gmra.mxu2 %v1094_v56 }
  0xbd   : > { %v567_v62 = vadd.f32 %v566_v59, %v484_v61 }
  0xbe   : > { %1066 = vmatmul.bf16.gmra.mxu1 %v972_v57 }
  0xbf   : > { %1428 = vmatmul.bf16.gmra.mxu0 %v1342_v60  ;;  %v494_v0 = vpop.f32.mrf.mxu2 }
  0xc3   : > { %v568_v1 = vpop.f32.mrf.mxu1 }
  0xc4   : > { %v486_v4 = vpop.f32.mrf.mxu0 }
  0xc5   : > { %v569_v6 = vadd.f32 %v568_v1, %v486_v4 }
  0xc7   : > { %v496_v9 = vpop.f32.mrf.mxu2 }
  0xcb   : > { %v571_v14 = vpop.f32.mrf.mxu1 }
  0xcc   : > { %1309 = vmatmul.bf16.gmra.mxu3 %v1219_v8  ;;  %v572_v16 = vadd.f32 %v571_v14, %v489_v44  ;;  %v923_v17 = vpop.f32.mrf.mxu0  ;;  %1185 = vmatmul.bf16.gmra.mxu2 %v1095_v12 }
  0xcf   : > { %v799_v18 = vpop.f32.mrf.mxu3  ;;  %1433 = vmatmul.bf16.gmra.mxu0 %v1343_v15  ;;  %v675_v20 = vpop.f32.mrf.mxu2 }
  0xd0   : > { %v700_v21 = vadd.f32 %v675_v20, %v562_v42 }
  0xd2   : > { %v824_v22 = vadd.f32 %v799_v18, %v700_v21 }
  0xd3   : > { %v573_v23 = vpop.f32.mrf.mxu1 }
  0xd4   : > { %v574_v26 = vadd.f32 %v573_v23, %v491_v53  ;;  %v925_v27 = vpop.f32.mrf.mxu0  ;;  %v2761_v30 = vadd.f32 %v923_v17, %v824_v22 }
  0xd7   : > { %v801_v28 = vpop.f32.mrf.mxu3  ;;  %v677_v33 = vpop.f32.mrf.mxu2 }
  0xd8   : > { %v701_v36 = vadd.f32 %v677_v33, %v2727_v49  ;;  %v1486_v49 = vld [vmem:[%s2907_s6 + $0x40] sm:$0xff] }
  0xd9   : > { %1530 = vperm.xlu2 %2331, %v1486_v49   ;;  %v1611_v49 = vld [vmem:[%s2906_s5 + $0x70] sm:$0xff] }
  0xda   : > { %v825_v38 = vadd.f32 %v801_v28, %v701_v36 }
  0xdb   : > { %v576_v39 = vpop.f32.mrf.mxu1 }
  0xdc   : > { %1314 = vmatmul.bf16.gmra.mxu3 %v1220_v31  ;;  %v577_v41 = vadd.f32 %v576_v39, %v494_v0  ;;  %v928_v42 = vpop.f32.mrf.mxu0  ;;  %1190 = vmatmul.bf16.gmra.mxu2 %v1096_v37  ;;  %v2768_v44 = vadd.f32 %v925_v27, %v825_v38  ;;  %v1612_v38 = vld [vmem:[%s2906_s5 + $0x78] sm:$0xff] }
  0xdd   : > { %1615 = vmatpush.msra.mxu1 %v1612_v38 }
  0xdf   : > { %v804_v43 = vpop.f32.mrf.mxu3  ;;  %1438 = vmatmul.bf16.gmra.mxu0 %v1344_v40  ;;  %v680_v45 = vpop.f32.mrf.mxu2  ;;  %1616 = vmatpush.msra.mxu1 %v1611_v49 }
  0xe0   : > { %v702_v46 = vadd.f32 %v680_v45, %v567_v62 }
  0xe2   : > { %v826_v47 = vadd.f32 %v804_v43, %v702_v46  ;;  %v2799_v46 = vld [vmem:[%s2903_s2] ss:$0 sm:$0xff] }
  0xe3   : > { %v578_v48 = vpop.f32.mrf.mxu1 }
  0xe4   : > { %v579_v50 = vadd.f32 %v578_v48, %v496_v9  ;;  %v930_v51 = vpop.f32.mrf.mxu0  ;;  %v2773_v53 = vadd.f32 %v928_v42, %v826_v47  ;;  %v1491_v48 = vpop.permute.xlu0 %1490 }
  0xe7   : > { %v806_v52 = vpop.f32.mrf.mxu3  ;;  %v682_v54 = vpop.f32.mrf.mxu2 }
  0xe8   : > { %v703_v55 = vadd.f32 %v682_v54, %v569_v6 }
  0xea   : > { %v827_v56 = vadd.f32 %v806_v52, %v703_v55 }
  0xeb   : > { %v581_v57 = vpop.f32.mrf.mxu1 }
  0xec   : > { %v582_v59 = vadd.f32 %v581_v57, %v2736_v58  ;;  %v933_v60 = vpop.f32.mrf.mxu0  ;;  %v2776_v62 = vadd.f32 %v930_v51, %v827_v56 }
  0xef   : > { %v809_v61 = vpop.f32.mrf.mxu3  ;;  %v685_v63 = vpop.f32.mrf.mxu2 }
  0xf0   : > { %v704_v0 = vadd.f32 %v685_v63, %v572_v16  ;;  %v1610_v63 = vld [vmem:[%s2906_s5 + $0x68] sm:$0xff] }
  0xf1   : > { %1617 = vmatpush.msra.mxu1 %v1610_v63 }
  0xf2   : > { %v828_v1 = vadd.f32 %v809_v61, %v704_v0  ;;  %v1609_v0 = vld [vmem:[%s2906_s5 + $0x60] sm:$0xff] }
  0xf3   : > { %v583_v2 = vpop.f32.mrf.mxu1  ;;  %1618 = vmatpush.msra.mxu1 %v1609_v0 }
  0xf4   : > { %v584_v3 = vadd.f32 %v583_v2, %v2743_v5  ;;  %v935_v4 = vpop.f32.mrf.mxu0  ;;  %v2779_v8 = vadd.f32 %v933_v60, %v828_v1 }
  0xf7   : > { %v811_v7 = vpop.f32.mrf.mxu3  ;;  %v687_v9 = vpop.f32.mrf.mxu2 }
  0xf8   : > { %v705_v6 = vadd.f32 %v687_v9, %v574_v26 }
  0xfa   : > { %v829_v10 = vadd.f32 %v811_v7, %v705_v6 }
  0xfb   : > { %v1047_v20 = vpop.f32.mrf.mxu1 }
  0xfc   : > { %v938_v11 = vpop.f32.mrf.mxu0  ;;  %v2781_v58 = vadd.f32 %v935_v4, %v829_v10 }
  0xff   : > { %v814_v12 = vpop.f32.mrf.mxu3  ;;  %v690_v13 = vpop.f32.mrf.mxu2 }
 0x100   : > { %v706_v14 = vadd.f32 %v690_v13, %v577_v41  ;;  %v1072_v41 = vadd.f32 %v1047_v20, %v2761_v30 }
 0x102   : > { %v830_v15 = vadd.f32 %v814_v12, %v706_v14 }
 0x103   : > { %v1049_v28 = vpop.f32.mrf.mxu1 }
 0x104   : > { %v940_v17 = vpop.f32.mrf.mxu0  ;;  %v2783_v18 = vadd.f32 %v938_v11, %v830_v15  ;;  %v1073_v30 = vadd.f32 %v1049_v28, %v2768_v44  ;;  %v1496_v44 = vpop.permute.xlu0 %1495 }
 0x105   : > { %v1501_v15 = vpop.permute.xlu1 %1500 }
 0x107   : > { %v816_v16 = vpop.f32.mrf.mxu3  ;;  %v692_v19 = vpop.f32.mrf.mxu2 }
 0x108   : > { %v707_v5 = vadd.f32 %v692_v19, %v579_v50 }
 0x10a   : > { %v831_v21 = vadd.f32 %v816_v16, %v707_v5 }
 0x10b   : > { %v1052_v40 = vpop.f32.mrf.mxu1 }
 0x10c   : > { %v943_v22 = vpop.f32.mrf.mxu0  ;;  %v2785_v24 = vadd.f32 %v940_v17, %v831_v21  ;;  %v1074_v1 = vadd.f32 %v1052_v40, %v2773_v53 }
 0x10f   : > { %v819_v23 = vpop.f32.mrf.mxu3  ;;  %v695_v25 = vpop.f32.mrf.mxu2 }
 0x110   : > { %v708_v26 = vadd.f32 %v695_v25, %v582_v59  ;;  %v1607_v25 = vld [vmem:[%s2906_s5 + $0x50] sm:$0xff] }
 0x112   : > { %v832_v27 = vadd.f32 %v819_v23, %v708_v26  ;;  %v1608_v23 = vld [vmem:[%s2906_s5 + $0x58] sm:$0xff] }
 0x113   : > { %v1054_v54 = vpop.f32.mrf.mxu1  ;;  %1619 = vmatpush.msra.mxu1 %v1608_v23 }
 0x114   : > { %v945_v29 = vpop.f32.mrf.mxu0  ;;  %v2787_v32 = vadd.f32 %v943_v22, %v832_v27  ;;  %v1075_v53 = vadd.f32 %v1054_v54, %v2776_v62 }
 0x115   : > { %1620 = vmatpush.msra.mxu1 %v1607_v25 }
 0x117   : > { %v821_v31 = vpop.f32.mrf.mxu3  ;;  %v697_v33 = vpop.f32.mrf.mxu2 }
 0x118   : > { %v709_v34 = vadd.f32 %v697_v33, %v584_v3 }
 0x11a   : > { %v833_v35 = vadd.f32 %v821_v31, %v709_v34 }
 0x11b   : > { %v1057_v6 = vpop.f32.mrf.mxu1 }
 0x11c   : > { %v1419_v36 = vpop.f32.mrf.mxu0  ;;  %v2792_v39 = vadd.f32 %v945_v29, %v833_v35  ;;  %v1506_v35 = vpop.permute.xlu1 %1505 }
 0x11f   : > { %v1295_v37 = vpop.f32.mrf.mxu3  ;;  %v1171_v42 = vpop.f32.mrf.mxu2 }
 0x120   : > { %v1196_v43 = vadd.f32 %v1171_v42, %v1072_v41 }
 0x122   : > { %v1320_v45 = vadd.f32 %v1295_v37, %v1196_v43 }
 0x123   : > { %v1059_v62 = vpop.f32.mrf.mxu1 }
 0x124   : > { %v1421_v47 = vpop.f32.mrf.mxu0  ;;  %v1444_v51 = vadd.f32 %v1419_v36, %v1320_v45  ;;  %v1076_v36 = vadd.f32 %v1057_v6, %v2779_v8 }
 0x126   : > { %v1458_v52 = vadd.f32 %v2799_v46, %v1444_v51 }
 0x127   : > { %v1297_v50 = vpop.f32.mrf.mxu3  ;;  %v1173_v55 = vpop.f32.mrf.mxu2 }
 0x128   : > { %1468 = vst [vmem:[%s2807_s13] sm:$0xff] %v1458_v52  ;;  %v1197_v56 = vadd.f32 %v1173_v55, %v1073_v30  ;;  %v1538_v2 = vmul.f32 %v1491_v48, %v1458_v52  ;;  %v1511_v48 = vpop.permute.xlu2 %1510  ;;  %v1606_v30 = vld [vmem:[%s2906_s5 + $0x48] sm:$0xff]  ;;  %v1077_v52 = vadd.f32 %v1059_v62, %v2781_v58  ;;  %v1604_v58 = vld [vmem:[%s2906_s5 + $0x38] sm:$0xff] }
 0x129   : > { %1621 = vmatpush.msra.mxu1 %v1606_v30 }
 0x12a   : > { %v1321_v57 = vadd.f32 %v1297_v50, %v1197_v56  ;;  %v1564_v10 = vmul.f32 %v1538_v2, %v1538_v2 }
 0x12b   : > { %v1062_v8 = vpop.f32.mrf.mxu1 }
 0x12c   : > { %v1424_v59 = vpop.f32.mrf.mxu0  ;;  %v1445_v61 = vadd.f32 %v1421_v47, %v1321_v57 }
 0x12e   : > { %v1459_v3 = vadd.f32 %v2799_v46, %v1445_v61 }
 0x12f   : > { %v1300_v60 = vpop.f32.mrf.mxu3  ;;  %v1176_v4 = vpop.f32.mrf.mxu2 }
 0x130   : > { %1469 = vst [vmem:[%s2807_s13 + $0x8] sm:$0xff] %v1459_v3  ;;  %v1539_v7 = vmul.f32 %v1496_v44, %v1459_v3  ;;  %v1198_v9 = vadd.f32 %v1176_v4, %v1074_v1  ;;  %v1605_v1 = vld [vmem:[%s2906_s5 + $0x40] sm:$0xff]  ;;  %v1516_v3 = vpop.permute.xlu2 %1515  ;;  %v2360_v4 = vmov 0.0  }
 0x131   : > { %1622 = vmatpush.msra.mxu1 %v1605_v1  ;;  %358 = vst [vmem:[#allocation2] sm:$0x3] %v2360_v4 }
 0x132   : > { %v1549_v11 = vadd.f32 %v1539_v7, %v1538_v2  ;;  %v1565_v12 = vmul.f32 %v1539_v7, %v1539_v7  ;;  %v1322_v13 = vadd.f32 %v1300_v60, %v1198_v9  ;;  %v1078_v7 = vadd.f32 %v1062_v8, %v2783_v18  ;;  %v1599_v8 = vld [vmem:[%s2906_s5 + $0x10] sm:$0xff] }
 0x133   : > { %v1064_v6 = vpop.f32.mrf.mxu1  ;;  %1623 = vmatpush.msra.mxu1 %v1604_v58 }
 0x134   : > { %v1426_v14 = vpop.f32.mrf.mxu0  ;;  %v1574_v17 = vadd.f32 %v1565_v12, %v1564_v10  ;;  %v1446_v19 = vadd.f32 %v1424_v59, %v1322_v13 }
 0x136   : > { %v1460_v5 = vadd.f32 %v2799_v46, %v1446_v19 }
 0x137   : > { %v1302_v16 = vpop.f32.mrf.mxu3  ;;  %v1178_v20 = vpop.f32.mrf.mxu2 }
 0x138   : > { %1470 = vst [vmem:[%s2807_s13 + $0x10] sm:$0xff] %v1460_v5  ;;  %v1540_v21 = vmul.f32 %v1501_v15, %v1460_v5  ;;  %v1199_v22 = vadd.f32 %v1178_v20, %v1075_v53  ;;  %v1079_v53 = vadd.f32 %v1064_v6, %v2785_v24  ;;  %v1521_v5 = vpop.permute.xlu0 %1520 }
 0x13a   : > { %v1550_v26 = vadd.f32 %v1549_v11, %v1540_v21  ;;  %v1566_v27 = vmul.f32 %v1540_v21, %v1540_v21  ;;  %v1323_v28 = vadd.f32 %v1302_v16, %v1199_v22 }
 0x13b   : > { %v1067_v25 = vpop.f32.mrf.mxu1 }
 0x13c   : > { %v1429_v29 = vpop.f32.mrf.mxu0  ;;  %v1575_v31 = vadd.f32 %v1574_v17, %v1566_v27  ;;  %v1447_v34 = vadd.f32 %v1426_v14, %v1323_v28 }
 0x13e   : > { %v1461_v37 = vadd.f32 %v2799_v46, %v1447_v34 }
 0x13f   : > { %v1305_v33 = vpop.f32.mrf.mxu3  ;;  %v1181_v38 = vpop.f32.mrf.mxu2 }
 0x140   : > { %1471 = vst [vmem:[%s2807_s13 + $0x18] sm:$0xff] %v1461_v37  ;;  %v1541_v40 = vmul.f32 %v1506_v35, %v1461_v37  ;;  %v1200_v41 = vadd.f32 %v1181_v38, %v1076_v36  ;;  %v1603_v38 = vld [vmem:[%s2906_s5 + $0x30] sm:$0xff] }
 0x141   : > { %1624 = vmatpush.msra.mxu1 %v1603_v38 }
 0x142   : > { %v1551_v42 = vadd.f32 %v1550_v26, %v1541_v40  ;;  %v1567_v43 = vmul.f32 %v1541_v40, %v1541_v40  ;;  %v1324_v45 = vadd.f32 %v1305_v33, %v1200_v41  ;;  %v1526_v33 = vpop.permute.xlu1 %1525 }
 0x144   : > { %v1431_v47 = vpop.f32.mrf.mxu0  ;;  %v1576_v50 = vadd.f32 %v1575_v31, %v1567_v43  ;;  %v1448_v49 = vadd.f32 %v1429_v29, %v1324_v45  ;;  %v1080_v31 = vadd.f32 %v1067_v25, %v2787_v32  ;;  %v1602_v32 = vld [vmem:[%s2906_s5 + $0x28] sm:$0xff]  ;;  %v1069_v45 = vpop.f32.mrf.mxu1 }
 0x145   : > { %1625 = vmatpush.msra.mxu1 %v1602_v32 }
 0x146   : > { %v1462_v54 = vadd.f32 %v2799_v46, %v1448_v49  ;;  %v1081_v49 = vadd.f32 %v1069_v45, %v2792_v39 }
 0x147   : > { %v1307_v51 = vpop.f32.mrf.mxu3  ;;  %v1183_v55 = vpop.f32.mrf.mxu2 }
 0x148   : > { %1472 = vst [vmem:[%s2807_s13 + $0x20] sm:$0xff] %v1462_v54  ;;  %v1542_v56 = vmul.f32 %v1511_v48, %v1462_v54  ;;  %v1201_v57 = vadd.f32 %v1183_v55, %v1077_v52  ;;  %v1531_v52 = vpop.permute.xlu2 %1530 }
 0x14a   : > { %v1552_v59 = vadd.f32 %v1551_v42, %v1542_v56  ;;  %v1568_v60 = vmul.f32 %v1542_v56, %v1542_v56  ;;  %v1325_v61 = vadd.f32 %v1307_v51, %v1201_v57  ;;  %v1600_v51 = vld [vmem:[%s2906_s5 + $0x18] sm:$0xff]  ;;  %v1598_v57 = vld [vmem:[%s2906_s5 + $0x8] sm:$0xff] }
 0x14c   : > { %v1577_v63 = vadd.f32 %v1576_v50, %v1568_v60  ;;  %v1449_v44 = vadd.f32 %v1431_v47, %v1325_v61  ;;  %v1434_v2 = vpop.f32.mrf.mxu0  ;;  %v1601_v50 = vld [vmem:[%s2906_s5 + $0x20] sm:$0xff] }
 0x14d   : > { %1626 = vmatpush.msra.mxu1 %v1601_v50 }
 0x14e   : > { %v1463_v9 = vadd.f32 %v2799_v46, %v1449_v44 }
 0x14f   : > { %v1310_v0 = vpop.f32.mrf.mxu3  ;;  %v1186_v10 = vpop.f32.mrf.mxu2  ;;  %1627 = vmatpush.msra.mxu1 %v1600_v51 }
 0x150   : > { %1473 = vst [vmem:[%s2807_s13 + $0x28] sm:$0xff] %v1463_v9  ;;  %v1543_v11 = vmul.f32 %v1516_v3, %v1463_v9  ;;  %v1202_v12 = vadd.f32 %v1186_v10, %v1078_v7 }
 0x151   : > { %1628 = vmatpush.msra.mxu1 %v1599_v8 }
 0x152   : > { %v1553_v13 = vadd.f32 %v1552_v59, %v1543_v11  ;;  %v1569_v14 = vmul.f32 %v1543_v11, %v1543_v11  ;;  %v1326_v15 = vadd.f32 %v1310_v0, %v1202_v12 }
 0x153   : > { %1629 = vmatpush.msra.mxu1 %v1598_v57 }
 0x154   : > { %v1578_v17 = vadd.f32 %v1577_v63, %v1569_v14  ;;  %v1450_v16 = vadd.f32 %v1434_v2, %v1326_v15  ;;  %v1436_v20 = vpop.f32.mrf.mxu0  ;;  %v1597_v63 = vld [vmem:[%s2906_s5] sm:$0xff]  ;;  %v1536_v2 = vpop.permute.xlu0 %1535 }
 0x155   : > { %1630 = vmatpush.msra.mxu1 %v1597_v63 }
 0x156   : > { %v1464_v18 = vadd.f32 %v2799_v46, %v1450_v16 }
 0x157   : > { %v1312_v19 = vpop.f32.mrf.mxu3  ;;  %v1188_v21 = vpop.f32.mrf.mxu2 }
 0x158   : > { %1474 = vst [vmem:[%s2807_s13 + $0x30] sm:$0xff] %v1464_v18  ;;  %v1203_v22 = vadd.f32 %v1188_v21, %v1079_v53  ;;  %v1544_v23 = vmul.f32 %v1521_v5, %v1464_v18  ;;  %v1548_v53 = vld [vmem:[#allocation2] sm:$0x3] }
 0x15a   : > { %v1327_v26 = vadd.f32 %v1312_v19, %v1203_v22  ;;  %v1554_v27 = vadd.f32 %v1553_v13, %v1544_v23  ;;  %v1570_v28 = vmul.f32 %v1544_v23, %v1544_v23 }
 0x15c   : > { %v1451_v62 = vadd.f32 %v1436_v20, %v1327_v26  ;;  %v1579_v29 = vadd.f32 %v1578_v17, %v1570_v28  ;;  %v1439_v40 = vpop.f32.mrf.mxu0 }
 0x15e   : > { %v1465_v24 = vadd.f32 %v2799_v46, %v1451_v62 }
 0x15f   : > { %v1315_v34 = vpop.f32.mrf.mxu3  ;;  %v1191_v35 = vpop.f32.mrf.mxu2 }
 0x160   : > { %1475 = vst [vmem:[%s2807_s13 + $0x38] sm:$0xff] %v1465_v24  ;;  %v1545_v36 = vmul.f32 %v1526_v33, %v1465_v24  ;;  %v1204_v37 = vadd.f32 %v1191_v35, %v1080_v31 }
 0x162   : > { %v1555_v41 = vadd.f32 %v1554_v27, %v1545_v36  ;;  %v1571_v42 = vmul.f32 %v1545_v36, %v1545_v36  ;;  %v1328_v43 = vadd.f32 %v1315_v34, %v1204_v37  ;;  %v1613_v37 = vld [vmem:[%s2904_s3] sm:$0x1] }
 0x164   : > { %v1580_v47 = vadd.f32 %v1579_v29, %v1571_v42  ;;  %v1452_v48 = vadd.f32 %v1439_v40, %v1328_v43  ;;  %v1441_v0 = vpop.f32.mrf.mxu0 }
 0x166   : > { %v1466_v30 = vadd.f32 %v2799_v46, %v1452_v48 }
 0x167   : > { %v1193_v54 = vpop.f32.mrf.mxu2  ;;  %v1317_v59 = vpop.f32.mrf.mxu3 }
 0x168   : > { %1476 = vst [vmem:[%s2807_s13 + $0x40] sm:$0xff] %v1466_v30  ;;  %v1546_v55 = vmul.f32 %v1531_v52, %v1466_v30  ;;  %v1205_v56 = vadd.f32 %v1193_v54, %v1081_v49 }
 0x16a   : > { %v1556_v39 = vadd.f32 %v1555_v41, %v1546_v55  ;;  %v1572_v60 = vmul.f32 %v1546_v55, %v1546_v55  ;;  %v1329_v61 = vadd.f32 %v1317_v59, %v1205_v56  ;;  %v1614_v41 = vld [vmem:[%s2905_s4] sm:$0x1] }
 0x16c   : > { %v1581_v44 = vadd.f32 %v1580_v47, %v1572_v60  ;;  %v1453_v1 = vadd.f32 %v1441_v0, %v1329_v61 }
 0x16e   : > { %v1467_v58 = vadd.f32 %v2799_v46, %v1453_v1 }
 0x170   : > { %1477 = vst [vmem:[%s2807_s13 + $0x48] sm:$0xff] %v1467_v58  ;;  %v1547_v3 = vmul.f32 %v1536_v2, %v1467_v58 }
 0x172   : > { %v1557_v4 = vadd.f32 %v1556_v39, %v1547_v3  ;;  %v1573_v7 = vmul.f32 %v1547_v3, %v1547_v3 }
 0x174   : > { %v1558_v9 = vrot.slane %v1557_v4, 4  ;;  %v1582_v6 = vadd.f32 %v1581_v44, %v1573_v7 }
 0x176   : > { %v1559_v10 = vadd.f32 %v1558_v9, %v1557_v4  ;;  %v1583_v11 = vrot.slane %v1582_v6, 4 }
 0x178   : > { %v1560_v12 = vrot.slane %v1559_v10, 2  ;;  %v1584_v13 = vadd.f32 %v1583_v11, %v1582_v6 }
 0x17a   : > { %v1561_v14 = vadd.f32 %v1560_v12, %v1559_v10  ;;  %v1585_v15 = vrot.slane %v1584_v13, 2 }
 0x17c   : > { %v1562_v17 = vrot.slane %v1561_v14, 1  ;;  %v1586_v16 = vadd.f32 %v1585_v15, %v1584_v13 }
 0x17e   : > { %v1587_v19 = vrot.slane %v1586_v16, 1  ;;  %v1563_v5 = vadd.f32 %v1562_v17, %v1561_v14 }
 0x180   : > { %v1588_v46 = vadd.f32 %v1587_v19, %v1586_v16 }
 0x182   : > { %v1590_v18 = vsel %vm1589_vm0, %v1563_v5, %v1588_v46 }
 0x183   : > { %v1591_v20 = vadd.f32 %v1590_v18, %v1548_v53 }
 0x185   : > { %1592 = vst [vmem:[#allocation2] sm:$0x3] %v1591_v20 }
 0x18c   : > { %v1596_v21 = vld [vmem:[#allocation2] sm:$0x3] }
 0x18d   : > { %1631 = vmatmul.f32.vlgmr.msra.gmra.mxu1 %v1596_v21 }
 0x20a   : > { %v1632_v22 = vpop.f32.mrf.mxu1 }
 0x20b   : > { %v1635_v23 = vmul.f32 0.0078125, %v1632_v22 }
 0x20d   : > { %v1636_v25 = vmul.f32 %v1635_v23, %v1635_v23 }
 0x20f   : > { %v1638_v26 = vrot.slane %v1636_v25, 7 }
 0x211   : > { %v1640_v27 = vsub.f32 %v1635_v23, %v1638_v26 }
 0x213   : > { %v1641_v28 = vmax.f32 %v1640_v27, 0.0 }
 0x215   : > { %v1642_v62 = vadd.f32 1e-05, %v1641_v28 }
 0x217   : > { %2333 = vrsqrt.f32 %v1642_v62  ;;  %vm1649_vm2 = vweird.f32 %v1642_v62 }
 0x21d   : > { %v2334_v29 = vpop.eup %2333 }
 0x21e   : > { %v1644_v31 = vmul.f32 %v2334_v29, %v1642_v62  ;;  %vm1650_vm1 = vweird.f32 %v2334_v29 }
 0x21f   : > { %vm1651_vm3 = vmor %vm1649_vm2, %vm1650_vm1 }
 0x220   : > { %v1645_v33 = vmul.f32 %v2334_v29, %v1644_v31 }
 0x222   : > { %v1646_v24 = vmul.f32 0.5, %v1645_v33 }
 0x224   : > { %v1647_v34 = vsub.f32 1.5, %v1646_v24 }
 0x226   : > { %v1648_v35 = vmul.f32 %v2334_v29, %v1647_v34 }
 0x228   : > { %v1652_v36 = vsel %vm1651_vm3, %v2334_v29, %v1648_v35 }
 0x229   : > { %1654 = vst [vmem:[#allocation1] sm:$0xff] %v1652_v36 }
 0x230   : > { %v1656_v38 = vld [vmem:[#allocation1 + $0x1] ss:$9 sm:$0xff] }
 0x231   : > { %v1658_v40 = vmul.f32 %v1656_v38, %v1613_v37 }
 0x233   : > { %v1659_v42 = vmul.f32 %v1658_v40, %v1635_v23 }
 0x235   : > { %v1660_v43 = vsub.f32 %v1614_v41, %v1659_v42 }
 0x237   : > { %v1662_v32 = vperm.slane %v1660_v43, 0 }
 0x239   : > { %v1664_v45 = vsel %vm1589_vm0, %v1658_v40, %v1662_v32 }
 0x23a   : > { %1665 = vst [vmem:[%s353_s14] sm:$0x3] %v1664_v45 }
 0x23b PF: > { %s19_s29 = sadd.s32 1, %s2357_s29   ;;  %s2910_s27 = smov %s2353_s28 }
 0x23c   : > { %p16_p5 = scmp.ge.s32.totalorder %s19_s29, 4   ;;  %s2911_s28 = smov %s2913_s30 }
 0x23e   :  { %18 = sbr.rel (!%p16_p5) target bundleno = 2 (0x2), region = 107 }

</bundles_post_ra>
